<compile_context>
chip_gen: v7x
topology: tpu7x:2x2x1
jax: 0.10.0
libtpu: 0.0.40
codegen_flags: <defaults>
</compile_context>

<pallas_src>
import functools

import jax
import jax.numpy as jnp
import numpy as np
from jax.experimental import pallas as pl
from jax.experimental.pallas import tpu as pltpu


# ------------------------------- fused kernel -------------------------------


def _fused_ir_kernel(*refs, k, stride, H, W, Wo, band_h, band_in_h, col_off,
                     identity, has_expand, n_cb, matmul_dtype):
    if has_expand:
        (x_ref, w1_ref, sb1_ref, dw_ref, sb2_ref, w2_ref, sb3_ref,
         o_ref, hid_ref, acc_ref) = refs
    else:
        (x_ref, dw_ref, sb2_ref, w2_ref, sb3_ref,
         o_ref, hid_ref, acc_ref) = refs
        w1_ref = sb1_ref = None

    pad = k // 2
    b = pl.program_id(1)
    c = pl.program_id(2)
    Cb = hid_ref.shape[-1]            # hidden channels handled by this step
    cbase = col_off - pad             # column of the first depthwise tap

    # Once per (n, band): zero the column halo of the scratch and the f32
    # projection accumulator.  Guarded on c == 0 (not n == 0) so every
    # TensorCore zeros its own scratch under parallel batch/band sharding.
    @pl.when(c == 0)
    def _():
        if pad:
            hid_ref[:, 0:col_off, :] = jnp.zeros(
                (band_in_h, col_off, Cb), jnp.float32)
            hid_ref[:, col_off + W:col_off + W + pad, :] = jnp.zeros(
                (band_in_h, pad, Cb), jnp.float32)
        acc_ref[...] = jnp.zeros_like(acc_ref)

    # Rows of the (row-zero-padded) input feeding this band's depthwise conv.
    r0 = b * (band_h * stride)
    xb = x_ref[pl.ds(r0, band_in_h), :, :]          # (band_in_h, W, Cin)

    # ---- 1x1 expansion + BN + ReLU6 into the f32 hidden scratch ------------
    if has_expand:
        x2d = xb.reshape(band_in_h * W, xb.shape[-1])
        w1 = w1_ref[...]
        if matmul_dtype is not None:
            x2d = x2d.astype(matmul_dtype)
            w1 = w1.astype(matmul_dtype)
        h = jnp.dot(x2d, w1, preferred_element_type=jnp.float32)
        h = jnp.clip(h * sb1_ref[0] + sb1_ref[1], 0.0, 6.0)
        h = h.reshape(band_in_h, W, Cb)
        if pad:
            # Rows falling in the depthwise zero padding must be zero *after*
            # the expansion (padding acts on the hidden activation, not on x).
            row = jax.lax.broadcasted_iota(
                jnp.int32, (band_in_h, 1, 1), 0) + r0
            valid = ((row >= pad) & (row < pad + H)).astype(jnp.float32)
            h = h * valid
        hid_ref[:, col_off:col_off + W, :] = h
    else:
        # expand_ratio == 1: the depthwise conv acts on x directly; the
        # row-padded x already carries the zero halo rows.
        hid_ref[:, col_off:col_off + W, :] = xb.astype(jnp.float32)

    # ---- depthwise k x k (stride s) + BN + ReLU6, all-f32 -------------------
    dwf = dw_ref[...].astype(jnp.float32)           # (k*k, Cb)
    acc = jnp.zeros((band_h, Wo, Cb), jnp.float32)
    if stride == 1:
        for i in range(k):
            for j in range(k):
                tap = hid_ref[i:i + band_h, cbase + j:cbase + j + Wo, :]
                acc = acc + tap * dwf[i * k + j]
    else:
        s = stride
        # One strided ref load per (row-phase, col-phase); each tap is then a
        # contiguous slice of that small banded phase value, and only one
        # phase is live at a time (low vreg/VMEM pressure).
        for r in range(min(s, k)):
            nrow = (band_in_h - r + s - 1) // s
            assert (k - 1 - r) // s + band_h <= nrow
            for q in range(min(s, k)):
                ncol = (W + 2 * pad - q + s - 1) // s
                assert (k - 1 - q) // s + Wo <= ncol
                phase = hid_ref[pl.ds(r, nrow, s),
                                pl.ds(cbase + q, ncol, s), :]
                for i in range(r, k, s):
                    for j in range(q, k, s):
                        tap = phase[i // s:i // s + band_h,
                                    j // s:j // s + Wo, :]
                        acc = acc + tap * dwf[i * k + j]
    y = jnp.clip(acc * sb2_ref[0] + sb2_ref[1], 0.0, 6.0)

    # ---- 1x1 projection: partial product over this hidden-channel block ----
    w2 = w2_ref[...]
    y2 = y.reshape(band_h * Wo, Cb)
    y2 = y2.astype(matmul_dtype if matmul_dtype is not None else w2.dtype)
    if matmul_dtype is not None:
        w2 = w2.astype(matmul_dtype)
    acc_ref[...] += jnp.dot(y2, w2, preferred_element_type=jnp.float32)

    # ---- finalize on the last channel block: BN3 (+ fused residual) --------
    @pl.when(c == n_cb - 1)
    def _():
        z = acc_ref[...] * sb3_ref[0] + sb3_ref[1]
        if identity:
            # stride == 1 and Cin == Cout == lane width here.
            xr = x_ref[pl.ds(pad + b * band_h, band_h), :, :]
            z = z + xr.reshape(band_h * Wo, z.shape[-1]).astype(jnp.float32)
        o_ref[...] = z.reshape(band_h, Wo, z.shape[-1]).astype(o_ref.dtype)


# ------------------------------ kernel wrapper -------------------------------


def _pick_band_rows(Ho, cap=32):
    if Ho <= cap:
        return Ho
    for d in range(cap, 7, -1):
        if Ho % d == 0:
            return d
    return Ho


def _vmem_capacity_bytes():
    try:
        return int(pltpu.get_tpu_info().vmem_capacity_bytes)
    except Exception:
        return 128 * 1024 * 1024


def inverted_residual_nhwc(x, params, *, stride, kernel_size,
                           hidden_block=None, band_rows=None,
                           matmul_dtype=None, pad_out_lanes=True,
                           vmem_limit_bytes=None):
    """Fused InvertedResidual on an NHWC input.  Returns NHWC output."""
    N, H, W, Cin = x.shape
    k = kernel_size
    pad = k // 2
    has_expand = "w1" in params
    Chid = params["dw"].shape[-1]
    Cout = params["w2"].shape[-1]
    if not has_expand:
        assert Chid == Cin, "expand_ratio==1 requires hidden_dim == inp"
    Ho = (H + 2 * pad - k) // stride + 1
    Wo = (W + 2 * pad - k) // stride + 1
    identity = (stride == 1 and Cin == Cout)

    # -- Cout lane padding (lane-dense accumulator / epilogue / store).
    #    Skipped when the residual is fused so the in-kernel add stays aligned.
    w2, sb3 = params["w2"], params["sb3"]
    Cpad = Cout
    if pad_out_lanes and not identity and Cout % 128 != 0:
        Cpad = ((Cout + 127) // 128) * 128
        w2 = jnp.pad(w2, ((0, 0), (0, Cpad - Cout)))
        sb3 = jnp.concatenate(
            [sb3, jnp.stack([jnp.ones((Cpad - Cout,), sb3.dtype),
                             jnp.zeros((Cpad - Cout,), sb3.dtype)])], axis=1)

    # -- host-side zero pad of H only (cheap); W halo lives in the VMEM scratch.
    xp = jnp.pad(x, ((0, 0), (pad, pad), (0, 0), (0, 0))) if pad else x
    Hp = H + 2 * pad

    # -- spatial row-band tiling over output rows (k-1 halo read in-kernel) --
    band_h = _pick_band_rows(Ho) if band_rows is None else band_rows
    if (band_rows is None and N == 1 and Ho // band_h == 1
            and Ho % 2 == 0 and Ho >= 8):
        band_h = Ho // 2          # give the v7x megacore >=2 parallel steps
    assert Ho % band_h == 0, "band_rows must divide the output height"
    n_b = Ho // band_h
    band_in_h = (band_h - 1) * stride + k
    col_off = 8 if pad else 0     # 8-sublane-aligned interior column offset

    cap = _vmem_capacity_bytes()

    def _need_bytes(cb_):
        itx = x.dtype.itemsize
        itw = params["w2"].dtype.itemsize
        x_blk = Hp * W * Cin * itx
        o_blk = band_h * Wo * Cpad * itx
        w_blk = (k * k * cb_ + 2 * cb_ + cb_ * Cpad + 2 * Cpad) * itw
        if has_expand:
            w_blk += (Cin * cb_ + 2 * cb_) * itw
        hid = band_in_h * (col_off + W + pad) * cb_ * 4
        accb = band_h * Wo * Cpad * 4
        return 2 * (x_blk + o_blk + w_blk) + hid + accb

    # -- hidden-channel blocking: full Chid if it fits the VMEM budget,
    #    otherwise fall back to 512/256/128 blocks (fewer accumulator passes).
    if hidden_block is not None:
        cb = hidden_block
    elif not has_expand:
        cb = Chid
    else:
        budget = int(0.4 * cap)
        cands = [Chid] + [c for c in (512, 256, 128)
                          if c < Chid and Chid % c == 0]
        cb = cands[-1]
        for cand in cands:
            if _need_bytes(cand) <= budget:
                cb = cand
                break
    assert Chid % cb == 0
    assert cb == Chid or cb % 128 == 0, \
        "hidden_block must be Chid or a multiple of 128"
    n_cb = Chid // cb

    if vmem_limit_bytes is None:
        need = _need_bytes(cb)
        vmem_limit_bytes = min(max(32 << 20, int(1.5 * need) + (8 << 20)),
                               int(0.85 * cap))
        vmem_limit_bytes = max(vmem_limit_bytes, min(need + (4 << 20), cap))

    in_specs = [pl.BlockSpec((None, Hp, W, Cin), lambda n, b, c: (n, 0, 0, 0))]
    args = [xp]
    if has_expand:
        in_specs += [pl.BlockSpec((Cin, cb), lambda n, b, c: (0, c)),
                     pl.BlockSpec((2, cb), lambda n, b, c: (0, c))]
        args += [params["w1"], params["sb1"]]
    in_specs += [pl.BlockSpec((k * k, cb), lambda n, b, c: (0, c)),
                 pl.BlockSpec((2, cb), lambda n, b, c: (0, c)),
                 pl.BlockSpec((cb, Cpad), lambda n, b, c: (c, 0)),
                 pl.BlockSpec((2, Cpad), lambda n, b, c: (0, 0))]
    args += [params["dw"], params["sb2"], w2, sb3]

    kernel = functools.partial(
        _fused_ir_kernel, k=k, stride=stride, H=H, W=W, Wo=Wo,
        band_h=band_h, band_in_h=band_in_h, col_off=col_off,
        identity=identity, has_expand=has_expand, n_cb=n_cb,
        matmul_dtype=matmul_dtype)

    flops = 2 * N * Ho * Wo * (k * k * Chid + Chid * Cpad)
    if has_expand:
        flops += 2 * N * H * W * Cin * Chid
    bytes_accessed = (int(xp.size) * xp.dtype.itemsize
                      + N * Ho * Wo * Cpad * x.dtype.itemsize
                      + sum(int(v.size) * v.dtype.itemsize
                            for v in params.values()))

    out = pl.pallas_call(
        kernel,
        out_shape=jax.ShapeDtypeStruct((N, Ho, Wo, Cpad), x.dtype),
        grid=(N, n_b, n_cb),
        in_specs=in_specs,
        out_specs=pl.BlockSpec((None, band_h, Wo, Cpad),
                               lambda n, b, c: (n, b, 0, 0)),
        scratch_shapes=[
            pltpu.VMEM((band_in_h, col_off + W + pad, cb), jnp.float32),
            pltpu.VMEM((band_h * Wo, Cpad), jnp.float32),
        ],
        compiler_params=pltpu.CompilerParams(
            dimension_semantics=("parallel", "parallel", "arbitrary"),
            vmem_limit_bytes=int(vmem_limit_bytes)),
        cost_estimate=pl.CostEstimate(flops=int(flops), transcendentals=0,
                                      bytes_accessed=int(bytes_accessed)),
    )(*args)
    return out[..., :Cout] if Cpad != Cout else out


def inverted_residual_forward(x_nchw, params, *, stride, expand_ratio,
                              kernel_size, **kwargs):
    """PyTorch-layout (NCHW) entry point matching InvertedResidual.forward."""
    assert ("w1" in params) == (expand_ratio != 1)
    # NOTE: these two transposes vanish if the surrounding model stays NHWC
    # (call inverted_residual_nhwc directly).
    x = jnp.transpose(x_nchw, (0, 2, 3, 1))
    y = inverted_residual_nhwc(x, params, stride=stride,
                               kernel_size=kernel_size, **kwargs)
    return jnp.transpose(y, (0, 3, 1, 2))


# ------------------------------ params helpers -------------------------------


def fold_bn(gamma, beta, mean, var, eps=1e-5):
    s = gamma / jnp.sqrt(var + eps)
    return jnp.stack([s, beta - mean * s])  # (2, C): row0 = scale, row1 = bias


def make_params(key, inp, oup, expand_ratio, kernel_size):
    hidden = int(round(inp * expand_ratio))
    ks = jax.random.split(key, 12)
    p = {}
    if expand_ratio != 1:
        p["w1"] = 0.1 * jax.random.normal(ks[0], (inp, hidden), jnp.float32)
        p["sb1"] = fold_bn(
            1.0 + 0.1 * jax.random.normal(ks[1], (hidden,), jnp.float32),
            0.05 * jax.random.normal(ks[2], (hidden,), jnp.float32),
            0.1 * jax.random.normal(ks[3], (hidden,), jnp.float32),
            0.5 + 0.1 * jnp.abs(jax.random.normal(ks[4], (hidden,), jnp.float32)),
        )
    p["dw"] = 0.2 * jax.random.normal(
        ks[5], (kernel_size * kernel_size, hidden), jnp.float32)
    p["sb2"] = fold_bn(
        1.0 + 0.1 * jax.random.normal(ks[6], (hidden,), jnp.float32),
        0.05 * jax.random.normal(ks[7], (hidden,), jnp.float32),
        0.1 * jax.random.normal(ks[8], (hidden,), jnp.float32),
        0.5 + 0.1 * jnp.abs(jax.random.normal(ks[9], (hidden,), jnp.float32)),
    )
    p["w2"] = 0.1 * jax.random.normal(ks[10], (hidden, oup), jnp.float32)
    p["sb3"] = fold_bn(
        jnp.ones((oup,), jnp.float32),
        jnp.zeros((oup,), jnp.float32),
        0.1 * jax.random.normal(ks[11], (oup,), jnp.float32),
        jnp.ones((oup,), jnp.float32),
    )
    return p, hidden


def cast_weights(params, dtype):
    """Conv weights (and activations outside) in `dtype`; folded BN stays f32."""
    return {k: (v.astype(dtype) if k in ("w1", "dw", "w2") else v)
            for k, v in params.items()}


# ---------------------------- pure-JAX reference -----------------------------


def reference_forward(x_nchw, params, *, stride, kernel_size):
    """Pure-JAX reference mirroring the kernel's numerics (same dtype casts)."""
    x = jnp.transpose(x_nchw, (0, 2, 3, 1))
    N, H, W, Cin = x.shape
    if "w1" in params:
        h = jnp.einsum("nhwc,cd->nhwd", x, params["w1"],
                       preferred_element_type=jnp.float32)
        h = jnp.clip(h * params["sb1"][0] + params["sb1"][1], 0.0, 6.0)
    else:
        h = x.astype(jnp.float32)
    k, s, p = kernel_size, stride, kernel_size // 2
    hp = jnp.pad(h, ((0, 0), (p, p), (p, p), (0, 0)))
    Ho = (H + 2 * p - k) // s + 1
    Wo = (W + 2 * p - k) // s + 1
    acc = jnp.zeros((N, Ho, Wo, h.shape[-1]), jnp.float32)
    for i in range(k):
        for j in range(k):
            xs = hp[:, i:i + (Ho - 1) * s + 1:s, j:j + (Wo - 1) * s + 1:s, :]
            acc = acc + xs * params["dw"][i * k + j].astype(jnp.float32)
    y = jnp.clip(acc * params["sb2"][0] + params["sb2"][1], 0.0, 6.0)
    z = jnp.einsum("nhwc,cd->nhwd", y.astype(params["w2"].dtype),
                   params["w2"], preferred_element_type=jnp.float32)
    z = z * params["sb3"][0] + params["sb3"][1]
    if s == 1 and Cin == params["w2"].shape[-1]:
        z = z + x.astype(jnp.float32)
    return jnp.transpose(z.astype(x.dtype), (0, 3, 1, 2))


# ----------------------------------- main ------------------------------------

if __name__ == "__main__":
    key = jax.random.PRNGKey(0)
    # (inp, oup, stride, expand_ratio, kernel, N, H, W, dtype, tol, kwargs)
    configs = [
        # expansion + residual + 2 row bands
        (16, 16, 1, 2, 3, 2, 16, 16, jnp.float32, 2e-3, dict(band_rows=8)),
        # expand_ratio == 1, k=5, identity
        (32, 32, 1, 1, 5, 2, 16, 16, jnp.float32, 2e-3, dict()),
        # no residual -> Cout lane padding (24 -> 128)
        (16, 24, 1, 4, 3, 2, 8, 8, jnp.float32, 2e-3, dict()),
        # stride 2, multi-band, two hidden-channel blocks (Chid=256, cb=128)
        (32, 24, 2, 8, 3, 2, 16, 16, jnp.float32, 5e-3,
         dict(hidden_block=128, band_rows=4)),
        # stride 2, expand_ratio == 1, k=5, batch=1 (auto band split)
        (16, 24, 2, 1, 5, 1, 16, 16, jnp.float32, 2e-3, dict()),
        # bf16 weights/activations
        (16, 16, 1, 2, 3, 2, 16, 16, jnp.bfloat16, 2e-2, dict()),
    ]
    for (inp, oup, st, er, ksz, N, H, W, dt, tol, kw) in configs:
        key, kx, kp = jax.random.split(key, 3)
        x = jax.random.normal(kx, (N, inp, H, W), jnp.float32).astype(dt)
        params, hidden = make_params(kp, inp, oup, er, ksz)
        params = cast_weights(params, dt)

        out = inverted_residual_forward(
            x, params, stride=st, expand_ratio=er, kernel_size=ksz, **kw)
        out = jax.block_until_ready(out)

        ref = reference_forward(x, params, stride=st, kernel_size=ksz)
        np.testing.assert_allclose(
            np.asarray(out.astype(jnp.float32)),
            np.asarray(ref.astype(jnp.float32)),
            rtol=tol, atol=tol)

        p = ksz // 2
        Ho = (H + 2 * p - ksz) // st + 1
        assert out.shape == (N, oup, Ho, Ho)

    print("KERNEL_OK")
</pallas_src>

<mosaic_0001>
module attributes {stable_mosaic.version = 11 : i64} {
  func.func @_fused_ir_kernel(%arg0: i32, %arg1: i32, %arg2: i32, %arg3: memref<1x18x16x16xf32, #tpu.memory_space<vmem>>, %arg4: memref<16x32xf32, #tpu.memory_space<vmem>>, %arg5: memref<2x32xf32, #tpu.memory_space<vmem>>, %arg6: memref<9x32xf32, #tpu.memory_space<vmem>>, %arg7: memref<2x32xf32, #tpu.memory_space<vmem>>, %arg8: memref<32x16xf32, #tpu.memory_space<vmem>>, %arg9: memref<2x16xf32, #tpu.memory_space<vmem>>, %arg10: memref<1x8x16x16xf32, #tpu.memory_space<vmem>>, %arg11: memref<10x25x32xf32, #tpu.memory_space<vmem>>, %arg12: memref<128x16xf32, #tpu.memory_space<vmem>>) attributes {dimension_semantics = [#tpu.dimension_semantics<parallel>, #tpu.dimension_semantics<parallel>, #tpu.dimension_semantics<arbitrary>], iteration_bounds = array<i64: 2, 2, 1>, scalar_prefetch = 0 : i64, scratch_operands = 2 : i64, tpu.core_type = #tpu.core_type<tc>, window_params = [{transform_indices = @transform_0, window_bounds = array<i64: 1, 18, 16, 16>}, {transform_indices = @transform_1, window_bounds = array<i64: 16, 32>}, {transform_indices = @transform_2, window_bounds = array<i64: 2, 32>}, {transform_indices = @transform_3, window_bounds = array<i64: 9, 32>}, {transform_indices = @transform_4, window_bounds = array<i64: 2, 32>}, {transform_indices = @transform_5, window_bounds = array<i64: 32, 16>}, {pipeline_mode = #tpu.pipeline_mode<synchronous>, transform_indices = @transform_6, window_bounds = array<i64: 2, 16>}, {transform_indices = @transform_7, window_bounds = array<i64: 1, 8, 16, 16>}]} {
    %c0_i32 = arith.constant 0 : i32
    %0 = arith.cmpi eq, %arg2, %c0_i32 : i32
    %1 = arith.extui %0 : i1 to i32
    %c0_i32_0 = arith.constant 0 : i32
    %2 = arith.cmpi ne, %1, %c0_i32_0 : i32
    scf.if %2 {
      %cst_54 = arith.constant 0.000000e+00 : f32
      %126 = vector.broadcast %cst_54 : f32 to vector<10x8x32xf32>
      %c0_55 = arith.constant 0 : index
      %c0_56 = arith.constant 0 : index
      %c0_57 = arith.constant 0 : index
      %127 = vector.load %arg11[%c0_55, %c0_56, %c0_57] : memref<10x25x32xf32, #tpu.memory_space<vmem>>, vector<10x8x32xf32>
      tpu.vector_store %arg11[%c0_55, %c0_56, %c0_57], %126 {strides = array<i32>} : memref<10x25x32xf32, #tpu.memory_space<vmem>>, vector<10x8x32xf32>,
      %cst_58 = arith.constant 0.000000e+00 : f32
      %128 = vector.broadcast %cst_58 : f32 to vector<10x1x32xf32>
      %c0_59 = arith.constant 0 : index
      %c24 = arith.constant 24 : index
      %c0_60 = arith.constant 0 : index
      %129 = vector.load %arg11[%c0_59, %c24, %c0_60] : memref<10x25x32xf32, #tpu.memory_space<vmem>>, vector<10x1x32xf32>
      tpu.vector_store %arg11[%c0_59, %c24, %c0_60], %128 {strides = array<i32>} : memref<10x25x32xf32, #tpu.memory_space<vmem>>, vector<10x1x32xf32>,
      %cst_61 = arith.constant 0.000000e+00 : f32
      %130 = vector.broadcast %cst_61 : f32 to vector<128x16xf32>
      %c0_62 = arith.constant 0 : index
      %c0_63 = arith.constant 0 : index
      %131 = vector.load %arg12[%c0_62, %c0_63] : memref<128x16xf32, #tpu.memory_space<vmem>>, vector<128x16xf32>
      tpu.vector_store %arg12[%c0_62, %c0_63], %130 {strides = array<i32>} : memref<128x16xf32, #tpu.memory_space<vmem>>, vector<128x16xf32>,
    } else {
    }
    %c8_i32 = arith.constant 8 : i32
    %3 = arith.muli %arg1, %c8_i32 : i32
    %c0 = arith.constant 0 : index
    %4 = arith.index_cast %3 : i32 to index
    %c0_1 = arith.constant 0 : index
    %c0_2 = arith.constant 0 : index
    %5 = vector.load %arg3[%c0, %4, %c0_1, %c0_2] : memref<1x18x16x16xf32, #tpu.memory_space<vmem>>, vector<1x10x16x16xf32>
    %6 = vector.shape_cast %5 : vector<1x10x16x16xf32> to vector<10x16x16xf32>
    %7 = vector.shape_cast %6 : vector<10x16x16xf32> to vector<160x16xf32>
    %c0_3 = arith.constant 0 : index
    %c0_4 = arith.constant 0 : index
    %8 = vector.load %arg4[%c0_3, %c0_4] : memref<16x32xf32, #tpu.memory_space<vmem>>, vector<16x32xf32>
    %cst = arith.constant dense<0.000000e+00> : vector<160x32xf32>
    %9 = tpu.matmul %7, %8, %cst {dimension_numbers = #tpu.dot_dimension_numbers<[1], [0], [0], [1], [0, 0, 1, 1], [], []>} : vector<160x16xf32>, vector<16x32xf32>, vector<160x32xf32> -> vector<160x32xf32>
    %c0_5 = arith.constant 0 : index
    %c0_6 = arith.constant 0 : index
    %10 = vector.load %arg5[%c0_5, %c0_6] : memref<2x32xf32, #tpu.memory_space<vmem>>, vector<1x32xf32>
    %11 = vector.shape_cast %10 : vector<1x32xf32> to vector<32xf32>
    %12 = vector.shape_cast %11 : vector<32xf32> to vector<1x32xf32>
    %13 = vector.broadcast %12 : vector<1x32xf32> to vector<160x32xf32>
    %14 = arith.mulf %9, %13 : vector<160x32xf32>
    %c1 = arith.constant 1 : index
    %c0_7 = arith.constant 0 : index
    %15 = vector.load %arg5[%c1, %c0_7] : memref<2x32xf32, #tpu.memory_space<vmem>>, vector<1x32xf32>
    %16 = vector.shape_cast %15 : vector<1x32xf32> to vector<32xf32>
    %17 = vector.shape_cast %16 : vector<32xf32> to vector<1x32xf32>
    %18 = vector.broadcast %17 : vector<1x32xf32> to vector<160x32xf32>
    %19 = arith.addf %14, %18 : vector<160x32xf32>
    %cst_8 = arith.constant 0.000000e+00 : f32
    %cst_9 = arith.constant 6.000000e+00 : f32
    %20 = vector.broadcast %cst_8 : f32 to vector<160x32xf32>
    %21 = arith.maximumf %20, %19 : vector<160x32xf32>
    %22 = vector.broadcast %cst_9 : f32 to vector<160x32xf32>
    %23 = arith.minimumf %22, %21 : vector<160x32xf32>
    %24 = vector.shape_cast %23 : vector<160x32xf32> to vector<10x16x32xf32>
    %25 = tpu.iota {dimensions = array<i32: 0>} : vector<10x1x1xi32>
    %26 = vector.broadcast %3 : i32 to vector<10x1x1xi32>
    %27 = arith.addi %25, %26 : vector<10x1x1xi32>
    %c1_i32 = arith.constant 1 : i32
    %28 = vector.broadcast %c1_i32 : i32 to vector<10x1x1xi32>
    %29 = arith.cmpi sge, %27, %28 : vector<10x1x1xi32>
    %c17_i32 = arith.constant 17 : i32
    %30 = vector.broadcast %c17_i32 : i32 to vector<10x1x1xi32>
    %31 = arith.cmpi slt, %27, %30 : vector<10x1x1xi32>
    %32 = arith.andi %29, %31 : vector<10x1x1xi1>
    %33 = arith.extui %32 : vector<10x1x1xi1> to vector<10x1x1xi32>
    %34 = arith.sitofp %33 : vector<10x1x1xi32> to vector<10x1x1xf32>
    %35 = vector.broadcast %34 : vector<10x1x1xf32> to vector<10x16x32xf32>
    %36 = arith.mulf %24, %35 : vector<10x16x32xf32>
    %c0_10 = arith.constant 0 : index
    %c8 = arith.constant 8 : index
    %c0_11 = arith.constant 0 : index
    %37 = vector.load %arg11[%c0_10, %c8, %c0_11] : memref<10x25x32xf32, #tpu.memory_space<vmem>>, vector<10x16x32xf32>
    tpu.vector_store %arg11[%c0_10, %c8, %c0_11], %36 {strides = array<i32>} : memref<10x25x32xf32, #tpu.memory_space<vmem>>, vector<10x16x32xf32>,
    %c0_12 = arith.constant 0 : index
    %c0_13 = arith.constant 0 : index
    %38 = vector.load %arg6[%c0_12, %c0_13] : memref<9x32xf32, #tpu.memory_space<vmem>>, vector<9x32xf32>
    %cst_14 = arith.constant 0.000000e+00 : f32
    %39 = vector.broadcast %cst_14 : f32 to vector<8x16x32xf32>
    %c0_15 = arith.constant 0 : index
    %c7 = arith.constant 7 : index
    %c0_16 = arith.constant 0 : index
    %40 = vector.load %arg11[%c0_15, %c7, %c0_16] : memref<10x25x32xf32, #tpu.memory_space<vmem>>, vector<8x16x32xf32>
    %41 = vector.extract_strided_slice %38 {offsets = [0, 0], sizes = [1, 32], strides = [1, 1]} : vector<9x32xf32> to vector<1x32xf32>
    %42 = vector.shape_cast %41 : vector<1x32xf32> to vector<32xf32>
    %43 = vector.shape_cast %42 : vector<32xf32> to vector<1x1x32xf32>
    %44 = vector.broadcast %43 : vector<1x1x32xf32> to vector<8x16x32xf32>
    %45 = arith.mulf %40, %44 : vector<8x16x32xf32>
    %46 = arith.addf %39, %45 : vector<8x16x32xf32>
    %c0_17 = arith.constant 0 : index
    %c8_18 = arith.constant 8 : index
    %c0_19 = arith.constant 0 : index
    %47 = vector.load %arg11[%c0_17, %c8_18, %c0_19] : memref<10x25x32xf32, #tpu.memory_space<vmem>>, vector<8x16x32xf32>
    %48 = vector.extract_strided_slice %38 {offsets = [1, 0], sizes = [1, 32], strides = [1, 1]} : vector<9x32xf32> to vector<1x32xf32>
    %49 = vector.shape_cast %48 : vector<1x32xf32> to vector<32xf32>
    %50 = vector.shape_cast %49 : vector<32xf32> to vector<1x1x32xf32>
    %51 = vector.broadcast %50 : vector<1x1x32xf32> to vector<8x16x32xf32>
    %52 = arith.mulf %47, %51 : vector<8x16x32xf32>
    %53 = arith.addf %46, %52 : vector<8x16x32xf32>
    %c0_20 = arith.constant 0 : index
    %c9 = arith.constant 9 : index
    %c0_21 = arith.constant 0 : index
    %54 = vector.load %arg11[%c0_20, %c9, %c0_21] : memref<10x25x32xf32, #tpu.memory_space<vmem>>, vector<8x16x32xf32>
    %55 = vector.extract_strided_slice %38 {offsets = [2, 0], sizes = [1, 32], strides = [1, 1]} : vector<9x32xf32> to vector<1x32xf32>
    %56 = vector.shape_cast %55 : vector<1x32xf32> to vector<32xf32>
    %57 = vector.shape_cast %56 : vector<32xf32> to vector<1x1x32xf32>
    %58 = vector.broadcast %57 : vector<1x1x32xf32> to vector<8x16x32xf32>
    %59 = arith.mulf %54, %58 : vector<8x16x32xf32>
    %60 = arith.addf %53, %59 : vector<8x16x32xf32>
    %c1_22 = arith.constant 1 : index
    %c7_23 = arith.constant 7 : index
    %c0_24 = arith.constant 0 : index
    %61 = vector.load %arg11[%c1_22, %c7_23, %c0_24] : memref<10x25x32xf32, #tpu.memory_space<vmem>>, vector<8x16x32xf32>
    %62 = vector.extract_strided_slice %38 {offsets = [3, 0], sizes = [1, 32], strides = [1, 1]} : vector<9x32xf32> to vector<1x32xf32>
    %63 = vector.shape_cast %62 : vector<1x32xf32> to vector<32xf32>
    %64 = vector.shape_cast %63 : vector<32xf32> to vector<1x1x32xf32>
    %65 = vector.broadcast %64 : vector<1x1x32xf32> to vector<8x16x32xf32>
    %66 = arith.mulf %61, %65 : vector<8x16x32xf32>
    %67 = arith.addf %60, %66 : vector<8x16x32xf32>
    %c1_25 = arith.constant 1 : index
    %c8_26 = arith.constant 8 : index
    %c0_27 = arith.constant 0 : index
    %68 = vector.load %arg11[%c1_25, %c8_26, %c0_27] : memref<10x25x32xf32, #tpu.memory_space<vmem>>, vector<8x16x32xf32>
    %69 = vector.extract_strided_slice %38 {offsets = [4, 0], sizes = [1, 32], strides = [1, 1]} : vector<9x32xf32> to vector<1x32xf32>
    %70 = vector.shape_cast %69 : vector<1x32xf32> to vector<32xf32>
    %71 = vector.shape_cast %70 : vector<32xf32> to vector<1x1x32xf32>
    %72 = vector.broadcast %71 : vector<1x1x32xf32> to vector<8x16x32xf32>
    %73 = arith.mulf %68, %72 : vector<8x16x32xf32>
    %74 = arith.addf %67, %73 : vector<8x16x32xf32>
    %c1_28 = arith.constant 1 : index
    %c9_29 = arith.constant 9 : index
    %c0_30 = arith.constant 0 : index
    %75 = vector.load %arg11[%c1_28, %c9_29, %c0_30] : memref<10x25x32xf32, #tpu.memory_space<vmem>>, vector<8x16x32xf32>
    %76 = vector.extract_strided_slice %38 {offsets = [5, 0], sizes = [1, 32], strides = [1, 1]} : vector<9x32xf32> to vector<1x32xf32>
    %77 = vector.shape_cast %76 : vector<1x32xf32> to vector<32xf32>
    %78 = vector.shape_cast %77 : vector<32xf32> to vector<1x1x32xf32>
    %79 = vector.broadcast %78 : vector<1x1x32xf32> to vector<8x16x32xf32>
    %80 = arith.mulf %75, %79 : vector<8x16x32xf32>
    %81 = arith.addf %74, %80 : vector<8x16x32xf32>
    %c2 = arith.constant 2 : index
    %c7_31 = arith.constant 7 : index
    %c0_32 = arith.constant 0 : index
    %82 = vector.load %arg11[%c2, %c7_31, %c0_32] : memref<10x25x32xf32, #tpu.memory_space<vmem>>, vector<8x16x32xf32>
    %83 = vector.extract_strided_slice %38 {offsets = [6, 0], sizes = [1, 32], strides = [1, 1]} : vector<9x32xf32> to vector<1x32xf32>
    %84 = vector.shape_cast %83 : vector<1x32xf32> to vector<32xf32>
    %85 = vector.shape_cast %84 : vector<32xf32> to vector<1x1x32xf32>
    %86 = vector.broadcast %85 : vector<1x1x32xf32> to vector<8x16x32xf32>
    %87 = arith.mulf %82, %86 : vector<8x16x32xf32>
    %88 = arith.addf %81, %87 : vector<8x16x32xf32>
    %c2_33 = arith.constant 2 : index
    %c8_34 = arith.constant 8 : index
    %c0_35 = arith.constant 0 : index
    %89 = vector.load %arg11[%c2_33, %c8_34, %c0_35] : memref<10x25x32xf32, #tpu.memory_space<vmem>>, vector<8x16x32xf32>
    %90 = vector.extract_strided_slice %38 {offsets = [7, 0], sizes = [1, 32], strides = [1, 1]} : vector<9x32xf32> to vector<1x32xf32>
    %91 = vector.shape_cast %90 : vector<1x32xf32> to vector<32xf32>
    %92 = vector.shape_cast %91 : vector<32xf32> to vector<1x1x32xf32>
    %93 = vector.broadcast %92 : vector<1x1x32xf32> to vector<8x16x32xf32>
    %94 = arith.mulf %89, %93 : vector<8x16x32xf32>
    %95 = arith.addf %88, %94 : vector<8x16x32xf32>
    %c2_36 = arith.constant 2 : index
    %c9_37 = arith.constant 9 : index
    %c0_38 = arith.constant 0 : index
    %96 = vector.load %arg11[%c2_36, %c9_37, %c0_38] : memref<10x25x32xf32, #tpu.memory_space<vmem>>, vector<8x16x32xf32>
    %97 = vector.extract_strided_slice %38 {offsets = [8, 0], sizes = [1, 32], strides = [1, 1]} : vector<9x32xf32> to vector<1x32xf32>
    %98 = vector.shape_cast %97 : vector<1x32xf32> to vector<32xf32>
    %99 = vector.shape_cast %98 : vector<32xf32> to vector<1x1x32xf32>
    %100 = vector.broadcast %99 : vector<1x1x32xf32> to vector<8x16x32xf32>
    %101 = arith.mulf %96, %100 : vector<8x16x32xf32>
    %102 = arith.addf %95, %101 : vector<8x16x32xf32>
    %c0_39 = arith.constant 0 : index
    %c0_40 = arith.constant 0 : index
    %103 = vector.load %arg7[%c0_39, %c0_40] : memref<2x32xf32, #tpu.memory_space<vmem>>, vector<1x32xf32>
    %104 = vector.shape_cast %103 : vector<1x32xf32> to vector<32xf32>
    %105 = vector.shape_cast %104 : vector<32xf32> to vector<1x1x32xf32>
    %106 = vector.broadcast %105 : vector<1x1x32xf32> to vector<8x16x32xf32>
    %107 = arith.mulf %102, %106 : vector<8x16x32xf32>
    %c1_41 = arith.constant 1 : index
    %c0_42 = arith.constant 0 : index
    %108 = vector.load %arg7[%c1_41, %c0_42] : memref<2x32xf32, #tpu.memory_space<vmem>>, vector<1x32xf32>
    %109 = vector.shape_cast %108 : vector<1x32xf32> to vector<32xf32>
    %110 = vector.shape_cast %109 : vector<32xf32> to vector<1x1x32xf32>
    %111 = vector.broadcast %110 : vector<1x1x32xf32> to vector<8x16x32xf32>
    %112 = arith.addf %107, %111 : vector<8x16x32xf32>
    %cst_43 = arith.constant 0.000000e+00 : f32
    %cst_44 = arith.constant 6.000000e+00 : f32
    %113 = vector.broadcast %cst_43 : f32 to vector<8x16x32xf32>
    %114 = arith.maximumf %113, %112 : vector<8x16x32xf32>
    %115 = vector.broadcast %cst_44 : f32 to vector<8x16x32xf32>
    %116 = arith.minimumf %115, %114 : vector<8x16x32xf32>
    %c0_45 = arith.constant 0 : index
    %c0_46 = arith.constant 0 : index
    %117 = vector.load %arg8[%c0_45, %c0_46] : memref<32x16xf32, #tpu.memory_space<vmem>>, vector<32x16xf32>
    %118 = vector.shape_cast %116 : vector<8x16x32xf32> to vector<128x32xf32>
    %c0_47 = arith.constant 0 : index
    %c0_48 = arith.constant 0 : index
    %119 = vector.load %arg12[%c0_47, %c0_48] : memref<128x16xf32, #tpu.memory_space<vmem>>, vector<128x16xf32>
    %cst_49 = arith.constant dense<0.000000e+00> : vector<128x16xf32>
    %120 = tpu.matmul %118, %117, %cst_49 {dimension_numbers = #tpu.dot_dimension_numbers<[1], [0], [0], [1], [0, 0, 1, 1], [], []>} : vector<128x32xf32>, vector<32x16xf32>, vector<128x16xf32> -> vector<128x16xf32>
    %121 = arith.addf %119, %120 : vector<128x16xf32>
    %c0_50 = arith.constant 0 : index
    %c0_51 = arith.constant 0 : index
    %122 = vector.load %arg12[%c0_50, %c0_51] : memref<128x16xf32, #tpu.memory_space<vmem>>, vector<128x16xf32>
    tpu.vector_store %arg12[%c0_50, %c0_51], %121 {strides = array<i32>} : memref<128x16xf32, #tpu.memory_space<vmem>>, vector<128x16xf32>,
    %c0_i32_52 = arith.constant 0 : i32
    %123 = arith.cmpi eq, %arg2, %c0_i32_52 : i32
    %124 = arith.extui %123 : i1 to i32
    %c0_i32_53 = arith.constant 0 : i32
    %125 = arith.cmpi ne, %124, %c0_i32_53 : i32
    scf.if %125 {
      %c0_54 = arith.constant 0 : index
      %c0_55 = arith.constant 0 : index
      %126 = vector.load %arg12[%c0_54, %c0_55] : memref<128x16xf32, #tpu.memory_space<vmem>>, vector<128x16xf32>
      %c0_56 = arith.constant 0 : index
      %c0_57 = arith.constant 0 : index
      %127 = vector.load %arg9[%c0_56, %c0_57] : memref<2x16xf32, #tpu.memory_space<vmem>>, vector<1x16xf32>
      %128 = vector.shape_cast %127 : vector<1x16xf32> to vector<16xf32>
      %129 = vector.shape_cast %128 : vector<16xf32> to vector<1x16xf32>
      %130 = vector.broadcast %129 : vector<1x16xf32> to vector<128x16xf32>
      %131 = arith.mulf %126, %130 : vector<128x16xf32>
      %c1_58 = arith.constant 1 : index
      %c0_59 = arith.constant 0 : index
      %132 = vector.load %arg9[%c1_58, %c0_59] : memref<2x16xf32, #tpu.memory_space<vmem>>, vector<1x16xf32>
      %133 = vector.shape_cast %132 : vector<1x16xf32> to vector<16xf32>
      %134 = vector.shape_cast %133 : vector<16xf32> to vector<1x16xf32>
      %135 = vector.broadcast %134 : vector<1x16xf32> to vector<128x16xf32>
      %136 = arith.addf %131, %135 : vector<128x16xf32>
      %c8_i32_60 = arith.constant 8 : i32
      %137 = arith.muli %arg1, %c8_i32_60 : i32
      %c1_i32_61 = arith.constant 1 : i32
      %138 = arith.addi %c1_i32_61, %137 : i32
      %c0_62 = arith.constant 0 : index
      %139 = arith.index_cast %138 : i32 to index
      %c0_63 = arith.constant 0 : index
      %c0_64 = arith.constant 0 : index
      %140 = vector.load %arg3[%c0_62, %139, %c0_63, %c0_64] : memref<1x18x16x16xf32, #tpu.memory_space<vmem>>, vector<1x8x16x16xf32>
      %141 = vector.shape_cast %140 : vector<1x8x16x16xf32> to vector<8x16x16xf32>
      %142 = vector.shape_cast %141 : vector<8x16x16xf32> to vector<128x16xf32>
      %143 = arith.addf %136, %142 : vector<128x16xf32>
      %144 = vector.shape_cast %143 : vector<128x16xf32> to vector<8x16x16xf32>
      %c0_65 = arith.constant 0 : index
      %c0_66 = arith.constant 0 : index
      %c0_67 = arith.constant 0 : index
      %c0_68 = arith.constant 0 : index
      %145 = vector.load %arg10[%c0_65, %c0_66, %c0_67, %c0_68] : memref<1x8x16x16xf32, #tpu.memory_space<vmem>>, vector<1x8x16x16xf32>
      %146 = vector.shape_cast %145 : vector<1x8x16x16xf32> to vector<8x16x16xf32>
      %147 = vector.shape_cast %144 : vector<8x16x16xf32> to vector<1x8x16x16xf32>
      tpu.vector_store %arg10[%c0_65, %c0_66, %c0_67, %c0_68], %147 {strides = array<i32>} : memref<1x8x16x16xf32, #tpu.memory_space<vmem>>, vector<1x8x16x16xf32>,
    } else {
    }
    return
  }
  func.func @transform_0(%arg0: i32, %arg1: i32, %arg2: i32) -> (i32, i32, i32, i32) {
    %c0_i32 = arith.constant 0 : i32
    %c0_i32_0 = arith.constant 0 : i32
    %c0_i32_1 = arith.constant 0 : i32
    %c0_i32_2 = arith.constant 0 : i32
    return %arg0, %c0_i32, %c0_i32_0, %c0_i32_1 : i32, i32, i32, i32
  }
  func.func @transform_1(%arg0: i32, %arg1: i32, %arg2: i32) -> (i32, i32) {
    %c0_i32 = arith.constant 0 : i32
    %c0_i32_0 = arith.constant 0 : i32
    return %c0_i32, %arg2 : i32, i32
  }
  func.func @transform_2(%arg0: i32, %arg1: i32, %arg2: i32) -> (i32, i32) {
    %c0_i32 = arith.constant 0 : i32
    %c0_i32_0 = arith.constant 0 : i32
    return %c0_i32, %arg2 : i32, i32
  }
  func.func @transform_3(%arg0: i32, %arg1: i32, %arg2: i32) -> (i32, i32) {
    %c0_i32 = arith.constant 0 : i32
    %c0_i32_0 = arith.constant 0 : i32
    return %c0_i32, %arg2 : i32, i32
  }
  func.func @transform_4(%arg0: i32, %arg1: i32, %arg2: i32) -> (i32, i32) {
    %c0_i32 = arith.constant 0 : i32
    %c0_i32_0 = arith.constant 0 : i32
    return %c0_i32, %arg2 : i32, i32
  }
  func.func @transform_5(%arg0: i32, %arg1: i32, %arg2: i32) -> (i32, i32) {
    %c0_i32 = arith.constant 0 : i32
    %c0_i32_0 = arith.constant 0 : i32
    return %arg2, %c0_i32 : i32, i32
  }
  func.func @transform_6(%arg0: i32, %arg1: i32, %arg2: i32) -> (i32, i32) {
    %c0_i32 = arith.constant 0 : i32
    %c0_i32_0 = arith.constant 0 : i32
    %c0_i32_1 = arith.constant 0 : i32
    return %c0_i32, %c0_i32_0 : i32, i32
  }
  func.func @transform_7(%arg0: i32, %arg1: i32, %arg2: i32) -> (i32, i32, i32, i32) {
    %c0_i32 = arith.constant 0 : i32
    %c0_i32_0 = arith.constant 0 : i32
    %c0_i32_1 = arith.constant 0 : i32
    return %arg0, %arg1, %c0_i32, %c0_i32_0 : i32, i32, i32, i32
  }
}

</mosaic_0001>

<bundles_post_ra>
// kernel: tpu_custom_call.1
= control target key start
LH: loop header
LB: loop body
LE: loop exit
PB: predicated region body
PF: predicated region fallthrough
CT: control target
= control target key end

     0   :  { %12 = vsyncpa [#allocation5], 0  ;;  %s3375_s0 = inlined_call_operand.vmem [shape: f32[2,18,16,16], index: 0, kind: input, shape index: {}]   ;;  %s3376_s1 = inlined_call_operand.vmem [shape: f32[16,32], index: 1, kind: input, shape index: {}]   ;;  %s3377_s2 = inlined_call_operand.vmem [shape: f32[2,32], index: 2, kind: input, shape index: {}]   ;;  %s3378_s3 = inlined_call_operand.vmem [shape: f32[9,32], index: 3, kind: input, shape index: {}]   ;;  %s3379_s4 = inlined_call_operand.vmem [shape: f32[2,32], index: 4, kind: input, shape index: {}]   ;;  %s3380_s5 = inlined_call_operand.vmem [shape: f32[32,16], index: 5, kind: input, shape index: {}]   ;;  %s3381_s6 = inlined_call_operand.vmem [shape: f32[2,16], index: 6, kind: input, shape index: {}]   ;;  %s3382_s7 = inlined_call_operand.hbm [shape: f32[2,16,16,16], index: 7, kind: output, shape index: {}]  }
   0x1   :  { %14 = vsyncpa [#allocation5 + $0x1], 0  ;;  %s2384_s24 = smov 0   ;;  %s2386_s25 = smov 0  }
   0x2   :  { %s2388_s26 = smov 0   ;;  %s2390_s27 = smov 0  }
   0x3   :  { %s2392_s28 = smov 0   ;;  %s2394_s29 = smov 0  }
   0x4   :  { %s2396_s30 = smov 0   ;;  %s2398_s8 = smov 0  }
   0x5 LB: > { %s1954_s9 = sadd.s32 4294967295, %s2338_s8   ;;  %s1955_s10 = sadd.s32 4294967294, %s2338_s8   ;;  %s2338_s8 = sphi %s2398_s8, %s20_s8   ;;  %s2334_s30 = sphi %s2396_s30, %s3403_s30   ;;  %s2330_s29 = sphi %s2394_s29, %s3402_s29   ;;  %s2326_s28 = sphi %s2392_s28, %s3401_s28   ;;  %s2322_s27 = sphi %s2390_s27, %s3400_s27   ;;  %s2318_s26 = sphi %s2388_s26, %s3399_s26   ;;  %s2314_s25 = sphi %s2386_s25, %s3398_s25   ;;  %s2310_s24 = sphi %s2384_s24, %s3397_s24  }
   0x6   : > { %s35_s11 = sadd.s32 1, %s2330_s29  ;;  %s39_s12 = sadd.s32 1, %s2334_s30 }
   0x7   : > { %p37_p0 = scmp.ge.s32.totalorder %s35_s11, 2  ;;  %p235_p1 = scmp.ne.s32.totalorder %s2318_s26, %s2314_s25 }
   0x8   : > { %p236_p2 = scmp.eq.s32.totalorder %s1954_s9, 3  ;;  %p241_p5 = scmp.ne.s32.totalorder %s2314_s25, %s2310_s24 }
   0x9   : > { %s3405_s11 = smov (%p37_p0, %s35_s11), 0  ;;  %s3407_s12 = smov (!%p37_p0, %s39_s12), %s2334_s30 }
   0xa   : > { %s221_s13 = ssub.s32 %s2330_s29, %s3405_s11  ;;  %p2435_p3 = por %p236_p2, %p235_p1 }
   0xb   : > { %p41_p4 = scmp.ge.s32.totalorder %s3407_s12, 2  ;;  %p242_p6 = scmp.eq.s32.totalorder %s1955_s10, 3 }
   0xc   : > { %p1963_p7 = scmp.ge.s32.totalorder %s2338_s8, 1  ;;  %p308_p9 = scmp.lt.s32.totalorder %s2338_s8, 5 }
   0xd   : > { %s3409_s12 = smov (%p41_p4, %s3407_s12), 0  ;;  %p2444_p8 = por %p242_p6, %p241_p5 }
   0xe   : > { %s220_s16 = ssub.s32 %s2334_s30, %s3409_s12  ;;  %s225_s17 = sadd.s32 1, %s2318_s26 }
   0xf   : > { %s222_s18 = sor.u32 %s221_s13, %s220_s16  ;;  %p309_p10 = pnand %p1963_p7, %p308_p9 }
  0x10   : > { %p223_p11 = scmp.eq.s32.totalorder %s222_s18, 0  ;;  %v455_v0 = vld [vmem:[%s3376_s1] sm:$0xff] (!%p309_p10)  ;;  %v456_v1 = vld [vmem:[%s3376_s1 + $0x8] sm:$0xff] (!%p309_p10)  ;;  %p361_p12 = scmp.lt.s32.totalorder (!%p309_p10), %s2326_s28, 1  ;;  %vm393_vm0 = vcmask (!%p309_p10), 261120   ;;  %vm415_vm1 = vcmask (!%p309_p10), 130048   ;;  %v892_v31 = vlaneseq (!%p309_p10) }
  0x11   : > { %312 = sbr.rel (%p309_p10) target bundleno = 619 (0x26b), region = 48  ;;  %v2157_v2 = vpack.c.bf16 (!%p309_p10), %v456_v1, %v455_v0  ;;  %v2340_v3 = vmov (!%p309_p10), 0.0   ;;  %s2046_s13 = sshll.u32 (!%p309_p10), %s2322_s27, 7  ;;  %vm404_vm2 = vcmask (!%p309_p10), 253952   ;;  %v1420_v24 = vld [vmem:[%s3380_s5] sm:$0xff] (!%p309_p10)  ;;  %v1421_v25 = vld [vmem:[%s3380_s5 + $0x8] sm:$0xff] (!%p309_p10) }
  0x12   : > { %s2453_s19 = scalar_select %p223_p11, %s2318_s26, %s225_s17  }
  0x13   : > { %394 = vst.msk [vmem:[#allocation2] sm:$0xff] (!%p309_p10), %vm393_vm0, %v2340_v3  ;;  %395 = vst.msk [vmem:[#allocation2 + $0x20] sm:$0xff] (!%p309_p10), %vm393_vm0, %v2340_v3  ;;  %2158 = vmatprep.subr.bf16.mxu0 (!%p309_p10), %v2157_v2  ;;  %v2161_v26 = vpack.c.bf16 (!%p309_p10), %v1421_v25, %v1420_v24  ;;  %v1422_v27 = vld [vmem:[%s3380_s5 + $0x10] sm:$0xff] (!%p309_p10)  ;;  %v1423_v28 = vld [vmem:[%s3380_s5 + $0x18] sm:$0xff] (!%p309_p10)  ;;  %v2594_v35 = vshrl.u32 (!%p309_p10), %v892_v31, 7  ;;  %s2048_s22 = sshll.u32 (!%p309_p10), %s2322_s27, 4 }
  0x14   : > { %396 = vst.msk [vmem:[#allocation2 + $0x40] sm:$0xff] (!%p309_p10), %vm393_vm0, %v2340_v3  ;;  %397 = vst.msk [vmem:[#allocation2 + $0x60] sm:$0xff] (!%p309_p10), %vm393_vm0, %v2340_v3  ;;  %2160 = vmatpush3.bf16.msra.mxu0 (!%p309_p10), %v2157_v2  ;;  %v2165_v29 = vpack.c.bf16 (!%p309_p10), %v1423_v28, %v1422_v27  ;;  %v2601_v38 = vld [vmem:[%s3377_s2] ss:$0 sm:$0xff] (!%p309_p10)  ;;  %v2613_v42 = vld [vmem:[%s3377_s2 + $0x1] ss:$0 sm:$0xff] (!%p309_p10) }
  0x15   : > { %398 = vst.msk [vmem:[#allocation2 + $0x80] sm:$0xff] (!%p309_p10), %vm393_vm0, %v2340_v3  ;;  %399 = vst.msk [vmem:[#allocation2 + $0xa0] sm:$0xff] (!%p309_p10), %vm393_vm0, %v2340_v3  ;;  %2162 = vmatprep.subr.bf16.mxu1 (!%p309_p10), %v2161_v26  ;;  %v946_v36 = vsub.s32 (!%p309_p10), 1, %v2594_v35  ;;  %v998_v37 = vsub.s32 (!%p309_p10), 2, %v2594_v35  ;;  %v2607_v40 = vld [vmem:[%s3378_s3] sm:$0xff] (!%p309_p10)  ;;  %v894_v41 = vsub.s32 (!%p309_p10), 0, %v2594_v35 }
  0x16   : > { %400 = vst.msk [vmem:[#allocation2 + $0xc0] sm:$0xff] (!%p309_p10), %vm393_vm0, %v2340_v3  ;;  %401 = vst.msk [vmem:[#allocation2 + $0xe0] sm:$0xff] (!%p309_p10), %vm393_vm0, %v2340_v3  ;;  %2164 = vmatpush3.bf16.msra.mxu1 (!%p309_p10), %v2161_v26  ;;  %v1103_v44 = vsub.s32 (!%p309_p10), 4, %v2594_v35  ;;  %v1051_v48 = vsub.s32 (!%p309_p10), 3, %v2594_v35  ;;  %v1155_v49 = vsub.s32 (!%p309_p10), 5, %v2594_v35  ;;  %s2042_s23 = sshll.u32 (!%p309_p10), %s2326_s28, 5 }
  0x17   : > { %402 = vst.msk [vmem:[#allocation2 + $0x100] sm:$0xff] (!%p309_p10), %vm393_vm0, %v2340_v3  ;;  %403 = vst.msk [vmem:[#allocation2 + $0x120] sm:$0xff] (!%p309_p10), %vm393_vm0, %v2340_v3  ;;  %2166 = vmatprep.subr.bf16.mxu1 (!%p309_p10), %v2165_v29  ;;  %v2628_v53 = vrot.slane (!%p309_p10), %v2607_v40, %v946_v36  ;;  %v2631_v54 = vrot.slane (!%p309_p10), %v2607_v40, %v998_v37  ;;  %v2638_v57 = vrot.slane (!%p309_p10), %v2607_v40, %v894_v41 }
  0x18   : > { %s2463_s9 = scalar_select %p361_p12, %s2326_s28, 1  ;;  %416 = vst.msk [vmem:[#allocation3] sm:$0xff] %vm415_vm1, %v2340_v3  ;;  %417 = vst.msk [vmem:[#allocation3 + $0x8] sm:$0xff] %vm415_vm1, %v2340_v3  ;;  %v2643_v60 = vrot.slane %v2607_v40, %v1103_v44  ;;  %v2647_v63 = vrot.slane %v2607_v40, %v1051_v48  ;;  %v2650_v0 = vrot.slane %v2607_v40, %v1155_v49 }
  0x19   : > { %418 = vst.msk [vmem:[#allocation3 + $0x10] sm:$0xff] %vm415_vm1, %v2340_v3  ;;  %419 = vst.msk [vmem:[#allocation3 + $0x18] sm:$0xff] %vm415_vm1, %v2340_v3 }
  0x1a   : > { %420 = vst.msk [vmem:[#allocation3 + $0x20] sm:$0xff] %vm415_vm1, %v2340_v3  ;;  %421 = vst.msk [vmem:[#allocation3 + $0x28] sm:$0xff] %vm415_vm1, %v2340_v3  ;;  %s2169_s10 = smul.u32 288, %s2463_s9  ;;  %2168 = vmatpush3.bf16.msra.mxu1 %v2165_v29  ;;  %s358_s9 = sand.u32 1, %s2314_s25  }
  0x1b   : > { %422 = vst.msk [vmem:[#allocation3 + $0x30] sm:$0xff] %vm415_vm1, %v2340_v3  ;;  %423 = vst.msk [vmem:[#allocation3 + $0x38] sm:$0xff] %vm415_vm1, %v2340_v3 }
  0x1c   : > { %424 = vst.msk [vmem:[#allocation3 + $0x40] sm:$0xff] %vm415_vm1, %v2340_v3  ;;  %425 = vst.msk [vmem:[#allocation3 + $0x48] sm:$0xff] %vm415_vm1, %v2340_v3  ;;  %s365_s18 = scalar_lea.vmem %s3375_s0, %s2169_s10  ;;  %s1791_s10 = sadd.s32 %s2048_s22, %s2042_s23 }
  0x1d   : > { %426 = vst.msk [vmem:[#allocation3 + $0x50] sm:$0xff] %vm415_vm1, %v2340_v3  ;;  %427 = vst.msk [vmem:[#allocation3 + $0x58] sm:$0xff] %vm415_vm1, %v2340_v3  ;;  %s2522_s20 = scalar_lea.vmem %s365_s18, %s2046_s13  ;;  %s1966_s18 = sshll.u32 %s2322_s27, 3 }
  0x1e   : > { %428 = vst.msk [vmem:[#allocation3 + $0x60] sm:$0xff] %vm415_vm1, %v2340_v3  ;;  %429 = vst.msk [vmem:[#allocation3 + $0x68] sm:$0xff] %vm415_vm1, %v2340_v3  ;;  %v435_v4 = vld [vmem:[%s2522_s20] sm:$0xff]  ;;  %v436_v5 = vld [vmem:[%s2522_s20 + $0x8] sm:$0xff]  ;;  %v2587_v30 = vstv %s1966_s18  ;;  %s1964_s18 = sshll.u32 %s358_s9, 7  ;;  %s2043_s27 = sshll.u32 %s1791_s10, 7 }
  0x1f   : > { %430 = vst.msk [vmem:[#allocation3 + $0x70] sm:$0xff] %vm415_vm1, %v2340_v3  ;;  %431 = vst.msk [vmem:[#allocation3 + $0x78] sm:$0xff] %vm415_vm1, %v2340_v3  ;;  %v437_v6 = vld [vmem:[%s2522_s20 + $0x10] sm:$0xff]  ;;  %2095 = vmatprep.mubr.msk.f32.mxu0 %vm415_vm1, %v435_v4  ;;  %v438_v7 = vld [vmem:[%s2522_s20 + $0x18] sm:$0xff]  ;;  %v774_v32 = vadd.s32 1, %v2587_v30  ;;  %v775_v33 = vadd.s32 2, %v2587_v30  ;;  %s3315_s17 = scalar_lea.hbm %s3382_s7, %s2043_s27 }
  0x20   : > { %2096 = vmatmul.mubr.msk.f32.vlgmr.msra.gmra.mrb[0].mxu0 %vm415_vm1, %v436_v5  ;;  %v439_v8 = vld [vmem:[%s2522_s20 + $0x20] sm:$0xff]  ;;  %v440_v9 = vld [vmem:[%s2522_s20 + $0x28] sm:$0xff]  ;;  %v441_v10 = vld [vmem:[%s2522_s20 + $0x30] sm:$0xff]  ;;  %405 = vst.msk [vmem:[#allocation2 + $0x18] sm:$0x1] %vm404_vm2, %v2340_v3  ;;  %v776_v34 = vadd.s32 3, %v2587_v30 }
  0x21   : > { %2098 = vmatprep.mubr.msk.f32.mxu0 %vm415_vm1, %v437_v6  ;;  %v442_v11 = vld [vmem:[%s2522_s20 + $0x38] sm:$0xff]  ;;  %v443_v12 = vld [vmem:[%s2522_s20 + $0x40] sm:$0xff]  ;;  %v444_v13 = vld [vmem:[%s2522_s20 + $0x48] sm:$0xff]  ;;  %406 = vst.msk [vmem:[#allocation2 + $0x38] sm:$0x1] %vm404_vm2, %v2340_v3  ;;  %vm783_vm3 = vcmp.ge.s32.totalorder %v2587_v30, 1 }
  0x22   : > { %v445_v14 = vld [vmem:[%s2522_s20 + $0x50] sm:$0xff]  ;;  %v446_v15 = vld [vmem:[%s2522_s20 + $0x58] sm:$0xff]  ;;  %v447_v16 = vld [vmem:[%s2522_s20 + $0x60] sm:$0xff]  ;;  %407 = vst.msk [vmem:[#allocation2 + $0x58] sm:$0x1] %vm404_vm2, %v2340_v3  ;;  %vm793_vm4 = vcmp.lt.s32.totalorder %v2587_v30, 17 }
  0x23   : > { %v448_v17 = vld [vmem:[%s2522_s20 + $0x68] sm:$0xff]  ;;  %v449_v18 = vld [vmem:[%s2522_s20 + $0x70] sm:$0xff]  ;;  %v450_v19 = vld [vmem:[%s2522_s20 + $0x78] sm:$0xff]  ;;  %408 = vst.msk [vmem:[#allocation2 + $0x78] sm:$0x1] %vm404_vm2, %v2340_v3  ;;  %vm784_vm5 = vcmp.ge.s32.totalorder %v774_v32, 1 }
  0x24   : > { %2099 = vmatmul.mubr.msk.f32.gmra.mrb[2].mxu0 %vm415_vm1, %v438_v7  ;;  %v451_v20 = vld [vmem:[%s2522_s20 + $0x80] sm:$0xff]  ;;  %v452_v21 = vld [vmem:[%s2522_s20 + $0x88] sm:$0xff]  ;;  %v453_v22 = vld [vmem:[%s2522_s20 + $0x90] sm:$0xff]  ;;  %409 = vst.msk [vmem:[#allocation2 + $0x98] sm:$0x1] %vm404_vm2, %v2340_v3  ;;  %vm794_vm6 = vcmp.lt.s32.totalorder %v774_v32, 17 }
  0x25   : > { %2101 = vmatprep.mubr.msk.f32.mxu0 %vm415_vm1, %v439_v8  ;;  %v454_v23 = vld [vmem:[%s2522_s20 + $0x98] sm:$0xff]  ;;  %410 = vst.msk [vmem:[#allocation2 + $0xb8] sm:$0x1] %vm404_vm2, %v2340_v3  ;;  %411 = vst.msk [vmem:[#allocation2 + $0xd8] sm:$0x1] %vm404_vm2, %v2340_v3  ;;  %vm785_vm7 = vcmp.ge.s32.totalorder %v775_v33, 1 }
  0x26   : > { %412 = vst.msk [vmem:[#allocation2 + $0xf8] sm:$0x1] %vm404_vm2, %v2340_v3  ;;  %413 = vst.msk [vmem:[#allocation2 + $0x118] sm:$0x1] %vm404_vm2, %v2340_v3  ;;  %vm795_vm8 = vcmp.lt.s32.totalorder %v775_v33, 17  ;;  %vm786_vm10 = vcmp.ge.s32.totalorder %v776_v34, 1 }
  0x27   : > { %414 = vst.msk [vmem:[#allocation2 + $0x138] sm:$0x1] %vm404_vm2, %v2340_v3  ;;  %vm803_vm9 = vmand %vm783_vm3, %vm793_vm4  ;;  %vm796_vm11 = vcmp.lt.s32.totalorder %v776_v34, 17  ;;  %v777_v39 = vadd.s32 4, %v2587_v30  ;;  %v778_v47 = vadd.s32 5, %v2587_v30  ;;  %v779_v59 = vadd.s32 6, %v2587_v30 }
  0x28   : > { %2102 = vmatmul.mubr.msk.f32.gmra.mrb[4].mxu0 %vm415_vm1, %v440_v9  ;;  %vm804_vm12 = vmand %vm784_vm5, %vm794_vm6  ;;  %v1990_v43 = vsel %vm803_vm9, 1.0, %v2340_v3  ;;  %v780_v5 = vadd.s32 7, %v2587_v30  ;;  %v1208_v8 = vsub.s32 6, %v2594_v35  ;;  %v1260_v9 = vsub.s32 7, %v2594_v35  ;;  %s3221_s21 = scalar_lea.vmem [#allocation4], %s1964_s18  ;;  %s2341_s22 = smov [#allocation4]  }
  0x29   : > { %2104 = vmatprep.mubr.msk.f32.mxu0 %vm415_vm1, %v441_v10  ;;  %vm805_vm13 = vmand %vm785_vm7, %vm795_vm8  ;;  %v2618_v46 = vsel %vm804_vm12, 1.0, %v2340_v3  ;;  %vm787_vm15 = vcmp.ge.s32.totalorder %v777_v39, 1  ;;  %vm797_vm2 = vcmp.lt.s32.totalorder %v777_v39, 17  ;;  %vm788_vm3 = vcmp.ge.s32.totalorder %v778_v47, 1  ;;  %s1794_s13 = sshll.u32 %s3221_s21, 4  ;;  %s2248_s23 = sshll.u32 %s2341_s22, 4  ;;  %s3310_s13 = int_to_ptr.vmem [resolvable:$true] %s1794_s13  ;;  %s2249_s23 = int_to_ptr.vmem [resolvable:$false] %s2248_s23 }
  0x2a   : > { %vm806_vm14 = vmand %vm786_vm10, %vm796_vm11  ;;  %v2625_v52 = vsel %vm805_vm13, 1.0, %v2340_v3  ;;  %vm798_vm4 = vcmp.lt.s32.totalorder %v778_v47, 17  ;;  %vm789_vm5 = vcmp.ge.s32.totalorder %v779_v59, 1  ;;  %vm799_vm6 = vcmp.lt.s32.totalorder %v779_v59, 17  ;;  %s2244_s18 = scalar_lea.vmem %s3310_s13, 2048  ;;  %s2250_s10 = scalar_lea.vmem %s2249_s23, 4096 }
  0x2b   : > { %v2635_v56 = vsel %vm806_vm14, 1.0, %v2340_v3  ;;  %vm790_vm7 = vcmp.ge.s32.totalorder %v780_v5, 1  ;;  %vm2665_vm8 = vmand %vm787_vm15, %vm797_vm2  ;;  %vm800_vm9 = vcmp.lt.s32.totalorder %v780_v5, 17  ;;  %v2720_v49 = vrot.slane %v2607_v40, %v1208_v8  ;;  %p2245_p13 = scmp.ne.s32.totalorder %s3310_s13, %s2244_s18  ;;  %p2251_p2 = scmp.lt.s32.totalorder %s3310_s13, %s2249_s23 }
  0x2c   : > { %2105 = vmatmul.mubr.msk.f32.gmra.mrb[6].mxu0 %vm415_vm1, %v442_v11  ;;  %vm2673_vm10 = vmand %vm788_vm3, %vm798_vm4  ;;  %v2690_v36 = vsel %vm2665_vm8, 1.0, %v2340_v3  ;;  %p2252_p4 = scmp.lt.s32.totalorder %s2250_s10, %s2244_s18 }
  0x2d   : > { %2107 = vmatprep.mubr.msk.f32.mxu0 %vm415_vm1, %v443_v12  ;;  %v781_v12 = vadd.s32 8, %v2587_v30  ;;  %vm2681_vm13 = vmand %vm789_vm5, %vm799_vm6  ;;  %v2703_v44 = vsel %vm2673_vm10, 1.0, %v2340_v3  ;;  %p2246_p0 = pnand %p2245_p13, %p2435_p3 }
  0x2e   : > { %vm2694_vm2 = vmand %vm790_vm7, %vm800_vm9  ;;  %v2730_v59 = vsel %vm2681_vm13, 1.0, %v2340_v3  ;;  %p2253_p5 = por %p2252_p4, %p2251_p2 }
  0x2f   : > { %vm791_vm11 = vcmp.ge.s32.totalorder %v781_v12, 1  ;;  %vm801_vm12 = vcmp.lt.s32.totalorder %v781_v12, 17  ;;  %p2247_p1 = pneg %p2246_p0 }
  0x30   : > { %2108 = vmatmul.mubr.msk.f32.gmra.mrb[8].mxu0 %vm415_vm1, %v444_v13  ;;  %vm2707_vm3 = vmand %vm791_vm11, %vm801_vm12 }
  0x31   : > { %2110 = vmatprep.mubr.msk.f32.mxu0 %vm415_vm1, %v445_v14  ;;  %p2254_p6 = pnand %p2253_p5, %p2247_p1 }
  0x34   : > { %2111 = vmatmul.mubr.msk.f32.gmra.mrb[10].mxu0 %vm415_vm1, %v446_v15 }
  0x35   : > { %2113 = vmatprep.mubr.msk.f32.mxu0 %vm415_vm1, %v447_v16  ;;  %v782_v16 = vadd.s32 9, %v2587_v30 }
  0x37   : > { %vm792_vm14 = vcmp.ge.s32.totalorder %v782_v16, 1  ;;  %vm802_vm15 = vcmp.lt.s32.totalorder %v782_v16, 17 }
  0x38   : > { %2114 = vmatmul.mubr.msk.f32.gmra.mrb[12].mxu0 %vm415_vm1, %v448_v17  ;;  %vm2715_vm4 = vmand %vm792_vm14, %vm802_vm15 }
  0x39   : > { %2116 = vmatprep.mubr.msk.f32.mxu0 %vm415_vm1, %v449_v18  ;;  %v2749_v8 = vsel %vm2715_vm4, 1.0, %v2340_v3 }
  0x3c   : > { %2117 = vmatmul.mubr.msk.f32.gmra.mrb[14].mxu0 %vm415_vm1, %v450_v19 }
  0x3d   : > { %2119 = vmatprep.mubr.msk.f32.mxu0 %vm415_vm1, %v451_v20 }
  0x40   : > { %2120 = vmatmul.mubr.msk.f32.gmra.mrb[16].mxu0 %vm415_vm1, %v452_v21 }
  0x41   : > { %2122 = vmatprep.mubr.msk.f32.mxu0 %vm415_vm1, %v453_v22 }
  0x44   : > { %2123 = vmatmul.mubr.msk.f32.gmra.mrb[18].mxu0 %vm415_vm1, %v454_v23 }
  0xf3   : > { %v2097_v45 = vpop.f32.mrb[0].mxu0 }
  0xf4   : > { %v689_v50 = vmul.f32 %v2097_v45, %v2601_v38  ;;  %v584_v51 = vpop.f32.mrb[1].mxu0 }
  0xf5   : > { %v688_v55 = vmul.f32 %v2601_v38, %v584_v51 }
  0xf6   : > { %v714_v58 = vadd.f32 %v2613_v42, %v689_v50  ;;  %v2723_v50 = vrot.slane %v2607_v40, %v1260_v9 }
  0xf7   : > { %v713_v61 = vadd.f32 %v2613_v42, %v688_v55  ;;  %v2100_v62 = vpop.f32.mrb[2].mxu0 }
  0xf8   : > { %v734_v1 = vmax.f32 %v714_v58, 0.0  ;;  %v691_v2 = vmul.f32 %v2100_v62, %v2601_v38  ;;  %v594_v4 = vpop.f32.mrb[3].mxu0 }
  0xf9   : > { %v733_v6 = vmax.f32 %v713_v61, 0.0  ;;  %v690_v7 = vmul.f32 %v2601_v38, %v594_v4  ;;  %v2735_v61 = vsel %vm2694_vm2, 1.0, %v2340_v3  ;;  %v2742_v4 = vsel %vm2707_vm3, 1.0, %v2340_v3 }
  0xfa   : > { %v754_v10 = vmin.f32 %v734_v1, 6.0  ;;  %v716_v11 = vadd.f32 %v2613_v42, %v691_v2 }
  0xfb   : > { %v753_v13 = vmin.f32 %v733_v6, 6.0  ;;  %v715_v14 = vadd.f32 %v2613_v42, %v690_v7  ;;  %v2103_v15 = vpop.f32.mrb[4].mxu0 }
  0xfc   : > { %v834_v17 = vmul.f32 %v1990_v43, %v754_v10  ;;  %v736_v18 = vmax.f32 %v716_v11, 0.0  ;;  %v693_v19 = vmul.f32 %v2103_v15, %v2601_v38  ;;  %v604_v20 = vpop.f32.mrb[5].mxu0 }
  0xfd   : > { %v833_v21 = vmul.f32 %v1990_v43, %v753_v13  ;;  %v735_v22 = vmax.f32 %v715_v14, 0.0  ;;  %v692_v23 = vmul.f32 %v2601_v38, %v604_v20 }
  0xfe   : > { %855 = vst.msk [vmem:[#allocation2 + $0x10] sm:$0xff] %vm393_vm0, %v834_v17  ;;  %v756_v25 = vmin.f32 %v736_v18, 6.0  ;;  %v718_v26 = vadd.f32 %v2613_v42, %v693_v19 }
  0xff   : > { %854 = vst.msk [vmem:[#allocation2 + $0x8] sm:$0xff] %vm393_vm0, %v833_v21  ;;  %v755_v28 = vmin.f32 %v735_v22, 6.0  ;;  %v717_v29 = vadd.f32 %v2613_v42, %v692_v23  ;;  %v2106_v30 = vpop.f32.mrb[6].mxu0 }
 0x100   : > { %v836_v32 = vmul.f32 %v2618_v46, %v756_v25  ;;  %v738_v33 = vmax.f32 %v718_v26, 0.0  ;;  %v695_v34 = vmul.f32 %v2106_v30, %v2601_v38  ;;  %v614_v35 = vpop.f32.mrb[7].mxu0 }
 0x101   : > { %v835_v39 = vmul.f32 %v2618_v46, %v755_v28  ;;  %v737_v41 = vmax.f32 %v717_v29, 0.0  ;;  %v694_v43 = vmul.f32 %v2601_v38, %v614_v35 }
 0x102   : > { %857 = vst.msk [vmem:[#allocation2 + $0x30] sm:$0xff] %vm393_vm0, %v836_v32  ;;  %v758_v47 = vmin.f32 %v738_v33, 6.0  ;;  %v720_v48 = vadd.f32 %v2613_v42, %v695_v34 }
 0x103   : > { %856 = vst.msk [vmem:[#allocation2 + $0x28] sm:$0xff] %vm393_vm0, %v835_v39  ;;  %v757_v51 = vmin.f32 %v737_v41, 6.0  ;;  %v719_v55 = vadd.f32 %v2613_v42, %v694_v43  ;;  %v2109_v58 = vpop.f32.mrb[8].mxu0 }
 0x104   : > { %v838_v62 = vmul.f32 %v2625_v52, %v758_v47  ;;  %v740_v40 = vmax.f32 %v720_v48, 0.0  ;;  %v697_v1 = vmul.f32 %v2109_v58, %v2601_v38  ;;  %v624_v2 = vpop.f32.mrb[9].mxu0 }
 0x105   : > { %v837_v5 = vmul.f32 %v2625_v52, %v757_v51  ;;  %v739_v6 = vmax.f32 %v719_v55, 0.0  ;;  %v696_v7 = vmul.f32 %v2601_v38, %v624_v2  ;;  %v929_v9 = vld [vmem:[#allocation2 + $0x10] sm:$0xff] }
 0x106   : > { %v981_v10 = vld [vmem:[#allocation2 + $0x11] sm:$0xff]  ;;  %859 = vst.msk [vmem:[#allocation2 + $0x50] sm:$0xff] %vm393_vm0, %v838_v62  ;;  %v760_v11 = vmin.f32 %v740_v40, 6.0  ;;  %v722_v12 = vadd.f32 %v2613_v42, %v697_v1  ;;  %v876_v13 = vld [vmem:[#allocation2 + $0x7] sm:$0xff]  ;;  %v949_v52 = vmul.f32 %v2628_v53, %v929_v9 }
 0x107   : > { %v928_v14 = vld [vmem:[#allocation2 + $0x8] sm:$0xff]  ;;  %v2755_v16 = vmul.f32 %v2631_v54, %v981_v10  ;;  %858 = vst.msk [vmem:[#allocation2 + $0x48] sm:$0xff] %vm393_vm0, %v837_v5  ;;  %v759_v17 = vmin.f32 %v739_v6, 6.0  ;;  %v721_v3 = vadd.f32 %v2613_v42, %v696_v7  ;;  %v2112_v18 = vpop.f32.mrb[10].mxu0  ;;  %v896_v19 = vmul.f32 %v2638_v57, %v876_v13 }
 0x108   : > { %v980_v15 = vld [vmem:[#allocation2 + $0x9] sm:$0xff]  ;;  %v948_v20 = vmul.f32 %v2628_v53, %v928_v14  ;;  %v840_v22 = vmul.f32 %v2635_v56, %v760_v11  ;;  %v742_v23 = vmax.f32 %v722_v12, 0.0  ;;  %v699_v24 = vmul.f32 %v2112_v18, %v2601_v38  ;;  %v634_v25 = vpop.f32.mrb[11].mxu0 }
 0x109   : > { %v877_v21 = vld [vmem:[#allocation2 + $0xf] sm:$0xff]  ;;  %v1000_v26 = vmul.f32 %v2631_v54, %v980_v15  ;;  %v839_v27 = vmul.f32 %v2635_v56, %v759_v17  ;;  %v741_v28 = vmax.f32 %v721_v3, 0.0  ;;  %v698_v29 = vmul.f32 %v2601_v38, %v634_v25  ;;  %v2804_v15 = vld [vmem:[%s3378_s3 + $0x8] ss:$0 sm:$0xff] }
 0x10a   : > { %v964_v30 = vadd.f32 %v948_v20, %v896_v19  ;;  %v2766_v31 = vld [vmem:[#allocation2 + $0x30] sm:$0xff]  ;;  %861 = vst.msk [vmem:[#allocation2 + $0x70] sm:$0xff] %vm393_vm0, %v840_v22  ;;  %v762_v32 = vmin.f32 %v742_v23, 6.0  ;;  %v724_v33 = vadd.f32 %v2613_v42, %v699_v24  ;;  %v2770_v34 = vld [vmem:[#allocation2 + $0x27] sm:$0xff]  ;;  %v897_v37 = vmul.f32 %v2638_v57, %v877_v21 }
 0x10b   : > { %v2772_v35 = vld [vmem:[#allocation2 + $0x28] sm:$0xff]  ;;  %v2777_v56 = vmul.f32 %v2643_v60, %v2766_v31  ;;  %860 = vst.msk [vmem:[#allocation2 + $0x68] sm:$0xff] %vm393_vm0, %v839_v27  ;;  %v761_v39 = vmin.f32 %v741_v28, 6.0  ;;  %v723_v41 = vadd.f32 %v2613_v42, %v698_v29  ;;  %v2115_v43 = vpop.f32.mrb[12].mxu0  ;;  %v1053_v47 = vmul.f32 %v2647_v63, %v2770_v34  ;;  %v2818_v28 = vld [vmem:[#allocation2 + $0x31] sm:$0xff] }
 0x10c   : > { %v1016_v45 = vadd.f32 %v1000_v26, %v964_v30  ;;  %v2783_v48 = vld [vmem:[#allocation2 + $0x29] sm:$0xff]  ;;  %v842_v46 = vmul.f32 %v2690_v36, %v762_v32  ;;  %v744_v51 = vmax.f32 %v724_v33, 0.0  ;;  %v701_v55 = vmul.f32 %v2115_v43, %v2601_v38  ;;  %v644_v58 = vpop.f32.mrb[13].mxu0 }
 0x10d   : > { %v1105_v62 = vmul.f32 %v2643_v60, %v2772_v35  ;;  %v841_v40 = vmul.f32 %v2690_v36, %v761_v39  ;;  %v743_v1 = vmax.f32 %v723_v41, 0.0  ;;  %v700_v2 = vmul.f32 %v2601_v38, %v644_v58  ;;  %v2814_v23 = vld [vmem:[#allocation2 + $0x2f] sm:$0xff] }
 0x10e   : > { %v1069_v5 = vadd.f32 %v1053_v47, %v1016_v45  ;;  %863 = vst.msk [vmem:[#allocation2 + $0x90] sm:$0xff] %vm393_vm0, %v842_v46  ;;  %v764_v6 = vmin.f32 %v744_v51, 6.0  ;;  %v726_v7 = vadd.f32 %v2613_v42, %v701_v55  ;;  %v1157_v9 = vmul.f32 %v2650_v0, %v2783_v48  ;;  %v2795_v10 = vld [vmem:[#allocation2 + $0x47] sm:$0xff]  ;;  %v2829_v45 = vld [vmem:[#allocation2 + $0x4f] sm:$0xff] }
 0x10f   : > { %v2797_v11 = vld [vmem:[#allocation2 + $0x48] sm:$0xff]  ;;  %v965_v12 = vadd.f32 %v949_v52, %v897_v37  ;;  %862 = vst.msk [vmem:[#allocation2 + $0x88] sm:$0xff] %vm393_vm0, %v841_v40  ;;  %v763_v36 = vmin.f32 %v743_v1, 6.0  ;;  %v725_v13 = vadd.f32 %v2613_v42, %v700_v2  ;;  %v2118_v14 = vpop.f32.mrb[14].mxu0  ;;  %v1210_v3 = vmul.f32 %v2720_v49, %v2795_v10  ;;  %v2835_v58 = vld [vmem:[#allocation2 + $0x50] sm:$0xff] }
 0x110   : > { %v1121_v17 = vadd.f32 %v1105_v62, %v1069_v5  ;;  %v2808_v18 = vld [vmem:[#allocation2 + $0x49] sm:$0xff]  ;;  %v844_v19 = vmul.f32 %v2703_v44, %v764_v6  ;;  %v746_v52 = vmax.f32 %v726_v7, 0.0  ;;  %v703_v20 = vmul.f32 %v2118_v14, %v2601_v38  ;;  %v654_v21 = vpop.f32.mrb[15].mxu0  ;;  %v2844_v7 = vld [vmem:[%s3379_s4] ss:$0 sm:$0xff] }
 0x111   : > { %v1262_v22 = vmul.f32 %v2723_v50, %v2797_v11  ;;  %v843_v24 = vmul.f32 %v2703_v44, %v763_v36  ;;  %v745_v25 = vmax.f32 %v725_v13, 0.0  ;;  %v702_v26 = vmul.f32 %v2601_v38, %v654_v21 }
 0x112   : > { %v1173_v27 = vadd.f32 %v1157_v9, %v1121_v17  ;;  %865 = vst.msk [vmem:[#allocation2 + $0xb0] sm:$0xff] %vm393_vm0, %v844_v19  ;;  %v766_v29 = vmin.f32 %v746_v52, 6.0  ;;  %v728_v30 = vadd.f32 %v2613_v42, %v703_v20  ;;  %v1314_v32 = vmul.f32 %v2804_v15, %v2808_v18 }
 0x113   : > { %v1017_v33 = vadd.f32 %v2755_v16, %v965_v12  ;;  %864 = vst.msk [vmem:[#allocation2 + $0xa8] sm:$0xff] %vm393_vm0, %v843_v24  ;;  %v765_v37 = vmin.f32 %v745_v25, 6.0  ;;  %v727_v44 = vadd.f32 %v2613_v42, %v702_v26  ;;  %v2121_v39 = vpop.f32.mrb[16].mxu0  ;;  %v1054_v43 = vmul.f32 %v2647_v63, %v2814_v23 }
 0x114   : > { %v1226_v41 = vadd.f32 %v1210_v3, %v1173_v27  ;;  %v846_v47 = vmul.f32 %v2730_v59, %v766_v29  ;;  %v748_v46 = vmax.f32 %v728_v30, 0.0  ;;  %v705_v51 = vmul.f32 %v2121_v39, %v2601_v38  ;;  %v664_v55 = vpop.f32.mrb[17].mxu0  ;;  %v2852_v3 = vld [vmem:[#allocation2 + $0x51] sm:$0xff] }
 0x115   : > { %v1158_v16 = vmul.f32 %v2650_v0, %v2818_v28  ;;  %v845_v62 = vmul.f32 %v2730_v59, %v765_v37  ;;  %v747_v40 = vmax.f32 %v727_v44, 0.0  ;;  %v704_v1 = vmul.f32 %v2601_v38, %v664_v55 }
 0x116   : > { %v1278_v2 = vadd.f32 %v1262_v22, %v1226_v41  ;;  %867 = vst.msk [vmem:[#allocation2 + $0xd0] sm:$0xff] %vm393_vm0, %v846_v47  ;;  %v768_v5 = vmin.f32 %v748_v46, 6.0  ;;  %v730_v6 = vadd.f32 %v2613_v42, %v705_v51  ;;  %v1070_v9 = vadd.f32 %v1054_v43, %v1017_v33  ;;  %v2859_v22 = vld [vmem:[%s3379_s4 + $0x1] ss:$0 sm:$0xff] }
 0x117   : > { %v1211_v12 = vmul.f32 %v2720_v49, %v2829_v45  ;;  %866 = vst.msk [vmem:[#allocation2 + $0xc8] sm:$0xff] %vm393_vm0, %v845_v62  ;;  %v767_v59 = vmin.f32 %v747_v40, 6.0  ;;  %v729_v36 = vadd.f32 %v2613_v42, %v704_v1  ;;  %v2124_v13 = vpop.f32.mrb[18].mxu0  ;;  %v1263_v17 = vmul.f32 %v2723_v50, %v2835_v58 }
 0x118   : > { %v1330_v14 = vadd.f32 %v1314_v32, %v1278_v2  ;;  %v848_v19 = vmul.f32 %v2735_v61, %v768_v5  ;;  %v750_v52 = vmax.f32 %v730_v6, 0.0  ;;  %v707_v20 = vmul.f32 %v2124_v13, %v2601_v38  ;;  %v674_v21 = vpop.f32.mrb[19].mxu0  ;;  %v1192_v6 = vld [vmem:[#allocation2 + $0x67] sm:$0xff] }
 0x119   : > { %v1122_v24 = vadd.f32 %v2777_v56, %v1070_v9  ;;  %v847_v25 = vmul.f32 %v2735_v61, %v767_v59  ;;  %v749_v26 = vmax.f32 %v729_v36, 0.0  ;;  %v706_v27 = vmul.f32 %v2601_v38, %v674_v21  ;;  %v2885_v9 = vld [vmem:[#allocation2 + $0x68] sm:$0xff] }
 0x11a   : > { %v1351_v29 = vmul.f32 %v2844_v7, %v1330_v14  ;;  %869 = vst.msk [vmem:[#allocation2 + $0xf0] sm:$0xff] %vm393_vm0, %v848_v19  ;;  %v770_v30 = vmin.f32 %v750_v52, 6.0  ;;  %v732_v32 = vadd.f32 %v2613_v42, %v707_v20  ;;  %v1315_v37 = vmul.f32 %v2804_v15, %v2852_v3  ;;  %v2895_v14 = vld [vmem:[#allocation2 + $0x69] sm:$0xff] }
 0x11b   : > { %v1174_v33 = vadd.f32 %v1158_v16, %v1122_v24  ;;  %868 = vst.msk [vmem:[#allocation2 + $0xe8] sm:$0xff] %vm393_vm0, %v847_v25  ;;  %v769_v44 = vmin.f32 %v749_v26, 6.0  ;;  %v731_v56 = vadd.f32 %v2613_v42, %v706_v27  ;;  %v898_v38 = vmul.f32 %v2770_v34, %v2638_v57  ;;  %v2910_v25 = vld [vmem:[#allocation2 + $0x6f] sm:$0xff] }
 0x11c   : > { %v1372_v61 = vadd.f32 %v2859_v22, %v1351_v29  ;;  %v850_v39 = vmul.f32 %v2742_v4, %v770_v30  ;;  %v752_v41 = vmax.f32 %v732_v32, 0.0  ;;  %v950_v47 = vmul.f32 %v2772_v35, %v2628_v53  ;;  %v2916_v29 = vld [vmem:[#allocation2 + $0x70] sm:$0xff] }
 0x11d   : > { %v1227_v43 = vadd.f32 %v1211_v12, %v1174_v33  ;;  %v849_v46 = vmul.f32 %v2742_v4, %v769_v44  ;;  %v751_v51 = vmax.f32 %v731_v56, 0.0  ;;  %v1002_v16 = vmul.f32 %v2783_v48, %v2631_v54  ;;  %v2924_v56 = vld [vmem:[#allocation2 + $0x71] sm:$0xff] }
 0x11e   : > { %v1388_v55 = vmax.f32 %v1372_v61, 0.0  ;;  %871 = vst.msk [vmem:[#allocation2 + $0x110] sm:$0xff] %vm393_vm0, %v850_v39  ;;  %v772_v42 = vmin.f32 %v752_v41, 6.0  ;;  %v966_v40 = vadd.f32 %v950_v47, %v898_v38  ;;  %v1055_v34 = vmul.f32 %v2795_v10, %v2647_v63 }
 0x11f   : > { %v1279_v62 = vadd.f32 %v1263_v17, %v1227_v43  ;;  %870 = vst.msk [vmem:[#allocation2 + $0x108] sm:$0xff] %vm393_vm0, %v849_v46  ;;  %v771_v1 = vmin.f32 %v751_v51, 6.0  ;;  %v899_v12 = vmul.f32 %v2814_v23, %v2638_v57  ;;  %v1107_v13 = vmul.f32 %v2797_v11, %v2643_v60 }
 0x120   : > { %v1404_v2 = vmin.f32 %v1388_v55, 6.0  ;;  %v852_v35 = vmul.f32 %v2749_v8, %v772_v42  ;;  %v1018_v5 = vadd.f32 %v1002_v16, %v966_v40  ;;  %v951_v17 = vmul.f32 %v2766_v31, %v2628_v53  ;;  %v2935_v55 = vld [vmem:[#allocation2 + $0x87] sm:$0xff] }
 0x121   : > { %v1331_v4 = vadd.f32 %v1315_v37, %v1279_v62  ;;  %v851_v48 = vmul.f32 %v2749_v8, %v771_v1  ;;  %v1159_v8 = vmul.f32 %v2808_v18, %v2650_v0  ;;  %v1212_v23 = vmul.f32 %v2720_v49, %v1192_v6  ;;  %v2937_v16 = vld [vmem:[#allocation2 + $0x88] sm:$0xff] }
 0x122   : > { %2133 = vmatprep.mubr.msk.f32.mxu1 %vm393_vm0, %v1404_v2  ;;  %873 = vst.msk [vmem:[#allocation2 + $0x130] sm:$0xff] %vm393_vm0, %v852_v35  ;;  %v1071_v36 = vadd.f32 %v1055_v34, %v1018_v5  ;;  %v1264_v19 = vmul.f32 %v2723_v50, %v2885_v9  ;;  %v1003_v52 = vmul.f32 %v2818_v28, %v2631_v54  ;;  %v2948_v2 = vld [vmem:[#allocation2 + $0x89] sm:$0xff] }
 0x123   : > { %v1352_v59 = vmul.f32 %v2844_v7, %v1331_v4  ;;  %872 = vst.msk [vmem:[#allocation2 + $0x128] sm:$0xff] %vm393_vm0, %v851_v48  ;;  %v967_v24 = vadd.f32 %v951_v17, %v899_v12  ;;  %v1056_v31 = vmul.f32 %v2829_v45, %v2647_v63  ;;  %v1316_v26 = vmul.f32 %v2804_v15, %v2895_v14 }
 0x124   : > { %v1123_v21 = vadd.f32 %v1107_v13, %v1071_v36  ;;  %v1108_v27 = vmul.f32 %v2835_v58, %v2643_v60  ;;  %v900_v28 = vmul.f32 %v2795_v10, %v2638_v57  ;;  %v952_v30 = vmul.f32 %v2797_v11, %v2628_v53 }
 0x125   : > { %v1373_v20 = vadd.f32 %v2859_v22, %v1352_v59  ;;  %v1019_v37 = vadd.f32 %v1003_v52, %v967_v24  ;;  %v1160_v44 = vmul.f32 %v2852_v3, %v2650_v0  ;;  %v1213_v61 = vmul.f32 %v2720_v49, %v2910_v25  ;;  %v2964_v52 = vld [vmem:[#allocation2 + $0x8f] sm:$0xff] }
 0x126   : > { %v1175_v33 = vadd.f32 %v1159_v8, %v1123_v21  ;;  %v968_v38 = vadd.f32 %v952_v30, %v900_v28  ;;  %v1004_v39 = vmul.f32 %v2808_v18, %v2631_v54  ;;  %v1057_v10 = vmul.f32 %v1192_v6, %v2647_v63 }
 0x127   : > { %v1389_v32 = vmax.f32 %v1373_v20, 0.0  ;;  %v1072_v11 = vadd.f32 %v1056_v31, %v1019_v37  ;;  %v1265_v47 = vmul.f32 %v2723_v50, %v2916_v29  ;;  %v1317_v46 = vmul.f32 %v2804_v15, %v2924_v56  ;;  %v2966_v20 = vld [vmem:[#allocation2 + $0x90] sm:$0xff] }
 0x128   : > { %v1228_v43 = vadd.f32 %v1212_v23, %v1175_v33  ;;  %v1020_v51 = vadd.f32 %v1004_v39, %v968_v38  ;;  %v901_v42 = vmul.f32 %v2829_v45, %v2638_v57  ;;  %v953_v18 = vmul.f32 %v2835_v58, %v2628_v53 }
 0x129   : > { %v1405_v41 = vmin.f32 %v1389_v32, 6.0  ;;  %v1124_v40 = vadd.f32 %v1108_v27, %v1072_v11  ;;  %v1109_v34 = vmul.f32 %v2885_v9, %v2643_v60  ;;  %v1161_v1 = vmul.f32 %v2895_v14, %v2650_v0 }
 0x12a   : > { %v1280_v62 = vadd.f32 %v1264_v19, %v1228_v43  ;;  %v1073_v35 = vadd.f32 %v1057_v10, %v1020_v51  ;;  %v969_v4 = vadd.f32 %v953_v18, %v901_v42  ;;  %v1005_v45 = vmul.f32 %v2852_v3, %v2631_v54  ;;  %v2983_v43 = vld [vmem:[#allocation2 + $0x91] sm:$0xff] }
 0x12b   : > { %2134 = vmatmul.mubr.msk.f32.vlgmr.msra.gmra.mrb[0].mxu1 %vm393_vm0, %v1405_v41  ;;  %v1058_v58 = vmul.f32 %v2910_v25, %v2647_v63  ;;  %v1176_v48 = vadd.f32 %v1160_v44, %v1124_v40  ;;  %v1214_v12 = vmul.f32 %v2720_v49, %v2935_v55  ;;  %v1266_v59 = vmul.f32 %v2723_v50, %v2937_v16 }
 0x12c   : > { %v1332_v5 = vadd.f32 %v1316_v26, %v1280_v62  ;;  %v1125_v36 = vadd.f32 %v1109_v34, %v1073_v35  ;;  %v1318_v13 = vmul.f32 %v2804_v15, %v2948_v2  ;;  %v1021_v17 = vadd.f32 %v1005_v45, %v969_v4  ;;  %v2990_v62 = vld [vmem:[#allocation2 + $0xa7] sm:$0xff] }
 0x12d   : > { %v902_v8 = vmul.f32 %v1192_v6, %v2638_v57  ;;  %v1229_v23 = vadd.f32 %v1213_v61, %v1176_v48  ;;  %v1110_v19 = vmul.f32 %v2916_v29, %v2643_v60  ;;  %v954_v21 = vmul.f32 %v2885_v9, %v2628_v53 }
 0x12e   : > { %v1353_v3 = vmul.f32 %v2844_v7, %v1332_v5  ;;  %v1177_v24 = vadd.f32 %v1161_v1, %v1125_v36  ;;  %v1074_v31 = vadd.f32 %v1058_v58, %v1021_v17  ;;  %v1162_v26 = vmul.f32 %v2924_v56, %v2650_v0  ;;  %v2994_v1 = vld [vmem:[#allocation2 + $0xa8] sm:$0xff] }
 0x12f   : > { %v1006_v6 = vmul.f32 %v2895_v14, %v2631_v54  ;;  %v1281_v28 = vadd.f32 %v1265_v47, %v1229_v23  ;;  %v970_v30 = vadd.f32 %v954_v21, %v902_v8  ;;  %v1059_v32 = vmul.f32 %v2935_v55, %v2647_v63 }
 0x130   : > { %v1374_v27 = vadd.f32 %v2859_v22, %v1353_v3  ;;  %v1230_v33 = vadd.f32 %v1214_v12, %v1177_v24  ;;  %v1126_v37 = vadd.f32 %v1110_v19, %v1074_v31  ;;  %v1215_v9 = vmul.f32 %v2720_v49, %v2964_v52  ;;  %v3007_v12 = vld [vmem:[#allocation2 + $0xa9] sm:$0xff] }
 0x131   : > { %v1267_v44 = vmul.f32 %v2723_v50, %v2966_v20  ;;  %v1333_v38 = vadd.f32 %v1317_v46, %v1281_v28  ;;  %v1022_v39 = vadd.f32 %v1006_v6, %v970_v30  ;;  %v1111_v14 = vmul.f32 %v2937_v16, %v2643_v60  ;;  %v3018_v6 = vld [vmem:[#allocation2 + $0xaf] sm:$0xff] }
 0x132   : > { %v1390_v61 = vmax.f32 %v1374_v27, 0.0  ;;  %v1282_v10 = vadd.f32 %v1266_v59, %v1230_v33  ;;  %v1178_v41 = vadd.f32 %v1162_v26, %v1126_v37  ;;  %v903_v11 = vmul.f32 %v2910_v25, %v2638_v57  ;;  %v3025_v37 = vld [vmem:[#allocation2 + $0xb0] sm:$0xff] }
 0x133   : > { %v955_v47 = vmul.f32 %v2916_v29, %v2628_v53  ;;  %v1354_v42 = vmul.f32 %v2844_v7, %v1333_v38  ;;  %v1075_v18 = vadd.f32 %v1059_v32, %v1022_v39  ;;  %v1007_v46 = vmul.f32 %v2924_v56, %v2631_v54 }
 0x134   : > { %v1406_v51 = vmin.f32 %v1390_v61, 6.0  ;;  %v1334_v40 = vadd.f32 %v1318_v13, %v1282_v10  ;;  %v1231_v34 = vadd.f32 %v1215_v9, %v1178_v41  ;;  %v1060_v25 = vmul.f32 %v2964_v52, %v2647_v63 }
 0x135   : > { %v971_v35 = vadd.f32 %v955_v47, %v903_v11  ;;  %v1375_v29 = vadd.f32 %v2859_v22, %v1354_v42  ;;  %v1319_v4 = vmul.f32 %v2804_v15, %v2983_v43  ;;  %v1127_v45 = vadd.f32 %v1111_v14, %v1075_v18 }
 0x136   : > { %2136 = vmatprep.mubr.msk.f32.mxu1 %vm393_vm0, %v1406_v51  ;;  %v1163_v58 = vmul.f32 %v2948_v2, %v2650_v0  ;;  %v1355_v56 = vmul.f32 %v2844_v7, %v1334_v40  ;;  %v1283_v5 = vadd.f32 %v1267_v44, %v1231_v34  ;;  %v1216_v48 = vmul.f32 %v2720_v49, %v2990_v62 }
 0x137   : > { %v1023_v59 = vadd.f32 %v1007_v46, %v971_v35  ;;  %v1391_v36 = vmax.f32 %v1375_v29, 0.0  ;;  %v1268_v17 = vmul.f32 %v2723_v50, %v2994_v1  ;;  %v1112_v8 = vmul.f32 %v2966_v20, %v2643_v60  ;;  %v3051_v29 = vld [vmem:[#allocation2 + $0xc8] sm:$0xff] }
 0x138   : > { %v1179_v13 = vadd.f32 %v1163_v58, %v1127_v45  ;;  %v1376_v3 = vadd.f32 %v2859_v22, %v1355_v56  ;;  %v1335_v23 = vadd.f32 %v1319_v4, %v1283_v5  ;;  %v904_v21 = vmul.f32 %v2935_v55, %v2638_v57  ;;  %v3027_v55 = vld [vmem:[#allocation2 + $0xb1] sm:$0xff] }
 0x139   : > { %v1076_v19 = vadd.f32 %v1060_v25, %v1023_v59  ;;  %v1407_v24 = vmin.f32 %v1391_v36, 6.0  ;;  %v1320_v26 = vmul.f32 %v2804_v15, %v3007_v12  ;;  %v956_v27 = vmul.f32 %v2937_v16, %v2628_v53  ;;  %v3049_v25 = vld [vmem:[#allocation2 + $0xc7] sm:$0xff] }
 0x13a   : > { %v1232_v31 = vadd.f32 %v1216_v48, %v1179_v13  ;;  %v1392_v28 = vmax.f32 %v1376_v3, 0.0  ;;  %v1356_v30 = vmul.f32 %v2844_v7, %v1335_v23  ;;  %v1164_v33 = vmul.f32 %v2983_v43, %v2650_v0  ;;  %v1302_v3 = vld [vmem:[#allocation2 + $0xc9] sm:$0xff] }
 0x13b   : > { %v1128_v32 = vadd.f32 %v1112_v8, %v1076_v19  ;;  %2137 = vmatmul.mubr.msk.f32.gmra.mrb[2].mxu1 %vm393_vm0, %v1407_v24  ;;  %v972_v44 = vadd.f32 %v956_v27, %v904_v21  ;;  %v1008_v61 = vmul.f32 %v2948_v2, %v2631_v54  ;;  %v1061_v16 = vmul.f32 %v2990_v62, %v2647_v63  ;;  %v3074_v27 = vld [vmem:[#allocation2 + $0xd0] sm:$0xff] }
 0x13c   : > { %v1284_v9 = vadd.f32 %v1268_v17, %v1232_v31  ;;  %v1408_v38 = vmin.f32 %v1392_v28, 6.0  ;;  %v1377_v39 = vadd.f32 %v2859_v22, %v1356_v30  ;;  %v1217_v10 = vmul.f32 %v2720_v49, %v3018_v6 }
 0x13d   : > { %v1180_v14 = vadd.f32 %v1164_v33, %v1128_v32  ;;  %v1269_v11 = vmul.f32 %v2723_v50, %v3025_v37  ;;  %v1321_v47 = vmul.f32 %v2804_v15, %v3027_v55  ;;  %v1024_v51 = vadd.f32 %v1008_v61, %v972_v44 }
 0x13e   : > { %v1336_v41 = vadd.f32 %v1320_v26, %v1284_v9  ;;  %2139 = vmatprep.mubr.msk.f32.mxu1 %vm393_vm0, %v1408_v38  ;;  %v1393_v2 = vmax.f32 %v1377_v39, 0.0  ;;  %v905_v18 = vmul.f32 %v2964_v52, %v2638_v57  ;;  %v957_v46 = vmul.f32 %v2966_v20, %v2628_v53  ;;  %v3072_v26 = vld [vmem:[#allocation2 + $0xcf] sm:$0xff] }
 0x13f   : > { %v1233_v42 = vadd.f32 %v1217_v10, %v1180_v14  ;;  %v1077_v34 = vadd.f32 %v1061_v16, %v1024_v51  ;;  %v1113_v35 = vmul.f32 %v2994_v1, %v2643_v60  ;;  %v1009_v4 = vmul.f32 %v2983_v43, %v2631_v54 }
 0x140   : > { %v1357_v40 = vmul.f32 %v2844_v7, %v1336_v41  ;;  %v1409_v45 = vmin.f32 %v1393_v2, 6.0  ;;  %v973_v56 = vadd.f32 %v957_v46, %v905_v18  ;;  %v1062_v52 = vmul.f32 %v3018_v6, %v2647_v63  ;;  %v1303_v41 = vld [vmem:[#allocation2 + $0xd1] sm:$0xff]  ;;  %v3095_v18 = vld [vmem:[#allocation2 + $0xe7] sm:$0xff] }
 0x141   : > { %v1285_v58 = vadd.f32 %v1269_v11, %v1233_v42  ;;  %v1129_v5 = vadd.f32 %v1113_v35, %v1077_v34  ;;  %v1165_v48 = vmul.f32 %v3007_v12, %v2650_v0  ;;  %v1218_v36 = vmul.f32 %v2720_v49, %v3049_v25  ;;  %v3097_v46 = vld [vmem:[#allocation2 + $0xe8] sm:$0xff] }
 0x142   : > { %v1378_v20 = vadd.f32 %v2859_v22, %v1357_v40  ;;  %2140 = vmatmul.mubr.msk.f32.gmra.mrb[4].mxu1 %vm393_vm0, %v1409_v45  ;;  %v1270_v43 = vmul.f32 %v2723_v50, %v3051_v29  ;;  %v1025_v13 = vadd.f32 %v1009_v4, %v973_v56  ;;  %v906_v23 = vmul.f32 %v2990_v62, %v2638_v57 }
 0x143   : > { %v1337_v59 = vadd.f32 %v1321_v47, %v1285_v58  ;;  %v1181_v8 = vadd.f32 %v1165_v48, %v1129_v5  ;;  %v958_v19 = vmul.f32 %v2994_v1, %v2628_v53  ;;  %v1114_v31 = vmul.f32 %v3025_v37, %v2643_v60 }
 0x144   : > { %v1394_v17 = vmax.f32 %v1378_v20, 0.0  ;;  %v1078_v24 = vadd.f32 %v1062_v52, %v1025_v13  ;;  %v1010_v28 = vmul.f32 %v3007_v12, %v2631_v54  ;;  %v1063_v62 = vmul.f32 %v3049_v25, %v2647_v63 }
 0x145   : > { %v1358_v21 = vmul.f32 %v2844_v7, %v1337_v59  ;;  %v1234_v32 = vadd.f32 %v1218_v36, %v1181_v8  ;;  %v974_v33 = vadd.f32 %v958_v19, %v906_v23  ;;  %v1322_v9 = vmul.f32 %v2804_v15, %v1302_v3  ;;  %v3112_v36 = vld [vmem:[#allocation2 + $0xe9] sm:$0xff] }
 0x146   : > { %v1410_v30 = vmin.f32 %v1394_v17, 6.0  ;;  %v1130_v44 = vadd.f32 %v1114_v31, %v1078_v24  ;;  %v1166_v61 = vmul.f32 %v3027_v55, %v2650_v0  ;;  %v1219_v12 = vmul.f32 %v2720_v49, %v3072_v26  ;;  %v3120_v19 = vld [vmem:[#allocation2 + $0xef] sm:$0xff] }
 0x147   : > { %v1379_v1 = vadd.f32 %v2859_v22, %v1358_v21  ;;  %v1286_v16 = vadd.f32 %v1270_v43, %v1234_v32  ;;  %v1271_v38 = vmul.f32 %v2723_v50, %v3074_v27  ;;  %v1026_v39 = vadd.f32 %v1010_v28, %v974_v33  ;;  %v3123_v28 = vld [vmem:[#allocation2 + $0xf0] sm:$0xff] }
 0x148   : > { %2142 = vmatprep.mubr.msk.f32.mxu1 %vm393_vm0, %v1410_v30  ;;  %v1182_v10 = vadd.f32 %v1166_v61, %v1130_v44  ;;  %v907_v11 = vmul.f32 %v3018_v6, %v2638_v57  ;;  %v959_v47 = vmul.f32 %v3025_v37, %v2628_v53  ;;  %v1115_v42 = vmul.f32 %v3051_v29, %v2643_v60 }
 0x149   : > { %v1395_v14 = vmax.f32 %v1379_v1, 0.0  ;;  %v1338_v51 = vadd.f32 %v1322_v9, %v1286_v16  ;;  %v1079_v2 = vadd.f32 %v1063_v62, %v1026_v39  ;;  %v1011_v40 = vmul.f32 %v3027_v55, %v2631_v54 }
 0x14a   : > { %v1235_v35 = vadd.f32 %v1219_v12, %v1182_v10  ;;  %v975_v4 = vadd.f32 %v959_v47, %v907_v11  ;;  %v1064_v6 = vmul.f32 %v3072_v26, %v2647_v63  ;;  %v1323_v45 = vmul.f32 %v2804_v15, %v1303_v41  ;;  %v1202_v47 = vld [vmem:[#allocation2 + $0x107] sm:$0xff] }
 0x14b   : > { %v1411_v34 = vmin.f32 %v1395_v14, 6.0  ;;  %v1359_v37 = vmul.f32 %v2844_v7, %v1338_v51  ;;  %v1131_v58 = vadd.f32 %v1115_v42, %v1079_v2  ;;  %v1167_v56 = vmul.f32 %v1302_v3, %v2650_v0  ;;  %v1305_v14 = vld [vmem:[#allocation2 + $0xf1] sm:$0xff] }
 0x14c   : > { %v1287_v52 = vadd.f32 %v1271_v38, %v1235_v35  ;;  %v1220_v20 = vmul.f32 %v2720_v49, %v3095_v18  ;;  %v1272_v55 = vmul.f32 %v2723_v50, %v3097_v46  ;;  %v1027_v5 = vadd.f32 %v1011_v40, %v975_v4 }
 0x14d   : > { %2143 = vmatmul.mubr.msk.f32.gmra.mrb[6].mxu1 %vm393_vm0, %v1411_v34  ;;  %v1380_v48 = vadd.f32 %v2859_v22, %v1359_v37  ;;  %v1183_v59 = vadd.f32 %v1167_v56, %v1131_v58  ;;  %v908_v43 = vmul.f32 %v3049_v25, %v2638_v57  ;;  %v960_v13 = vmul.f32 %v3051_v29, %v2628_v53  ;;  %v1254_v34 = vld [vmem:[#allocation2 + $0x108] sm:$0xff] }
 0x14e   : > { %v1339_v17 = vadd.f32 %v1323_v45, %v1287_v52  ;;  %v1080_v8 = vadd.f32 %v1064_v6, %v1027_v5  ;;  %v1116_v23 = vmul.f32 %v3074_v27, %v2643_v60  ;;  %v1012_v21 = vmul.f32 %v1302_v3, %v2631_v54  ;;  %v1306_v6 = vld [vmem:[#allocation2 + $0x109] sm:$0xff] }
 0x14f   : > { %v1396_v24 = vmax.f32 %v1380_v48, 0.0  ;;  %v1236_v31 = vadd.f32 %v1220_v20, %v1183_v59  ;;  %v976_v30 = vadd.f32 %v960_v13, %v908_v43  ;;  %v1065_v25 = vmul.f32 %v3095_v18, %v2647_v63 }
 0x150   : > { %v1360_v32 = vmul.f32 %v2844_v7, %v1339_v17  ;;  %v1324_v29 = vmul.f32 %v2804_v15, %v3112_v36  ;;  %v1132_v33 = vadd.f32 %v1116_v23, %v1080_v8  ;;  %v1168_v62 = vmul.f32 %v1303_v41, %v2650_v0 }
 0x151   : > { %v1412_v1 = vmin.f32 %v1396_v24, 6.0  ;;  %v1288_v9 = vadd.f32 %v1272_v55, %v1236_v31  ;;  %v1221_v3 = vmul.f32 %v2720_v49, %v3120_v19  ;;  %v1028_v44 = vadd.f32 %v1012_v21, %v976_v30  ;;  %v1203_v24 = vld [vmem:[#allocation2 + $0x10f] sm:$0xff] }
 0x152   : > { %v1381_v61 = vadd.f32 %v2859_v22, %v1360_v32  ;;  %v1184_v16 = vadd.f32 %v1168_v62, %v1132_v33  ;;  %v1273_v12 = vmul.f32 %v2723_v50, %v3123_v28  ;;  %v909_v38 = vmul.f32 %v3072_v26, %v2638_v57  ;;  %v1255_v31 = vld [vmem:[#allocation2 + $0x110] sm:$0xff] }
 0x153   : > { %2145 = vmatprep.mubr.msk.f32.mxu1 %vm393_vm0, %v1412_v1  ;;  %v1340_v39 = vadd.f32 %v1324_v29, %v1288_v9  ;;  %v1081_v10 = vadd.f32 %v1065_v25, %v1028_v44  ;;  %v1117_v11 = vmul.f32 %v3097_v46, %v2643_v60  ;;  %v961_v51 = vmul.f32 %v3074_v27, %v2628_v53 }
 0x154   : > { %v1397_v2 = vmax.f32 %v1381_v61, 0.0  ;;  %v1237_v42 = vadd.f32 %v1221_v3, %v1184_v16  ;;  %v1169_v40 = vmul.f32 %v3112_v36, %v2650_v0  ;;  %v1013_v26 = vmul.f32 %v1303_v41, %v2631_v54 }
 0x155   : > { %v1361_v35 = vmul.f32 %v2844_v7, %v1340_v39  ;;  %v1133_v4 = vadd.f32 %v1117_v11, %v1081_v10  ;;  %v977_v37 = vadd.f32 %v961_v51, %v909_v38  ;;  %v1066_v45 = vmul.f32 %v3120_v19, %v2647_v63  ;;  %v1307_v10 = vld [vmem:[#allocation2 + $0x111] sm:$0xff] }
 0x156   : > { %v1413_v58 = vmin.f32 %v1397_v2, 6.0  ;;  %v1289_v56 = vadd.f32 %v1273_v12, %v1237_v42  ;;  %v1325_v27 = vmul.f32 %v2804_v15, %v1305_v14  ;;  %v1222_v52 = vmul.f32 %v2720_v49, %v1202_v47  ;;  %v1204_v12 = vld [vmem:[#allocation2 + $0x127] sm:$0xff] }
 0x157   : > { %v1382_v20 = vadd.f32 %v2859_v22, %v1361_v35  ;;  %v1185_v55 = vadd.f32 %v1169_v40, %v1133_v4  ;;  %v1274_v5 = vmul.f32 %v2723_v50, %v1254_v34  ;;  %v1029_v41 = vadd.f32 %v1013_v26, %v977_v37 }
 0x158   : > { %2146 = vmatmul.mubr.msk.f32.gmra.mrb[8].mxu1 %vm393_vm0, %v1413_v58  ;;  %v1341_v48 = vadd.f32 %v1325_v27, %v1289_v56  ;;  %v1326_v59 = vmul.f32 %v2804_v15, %v1306_v6  ;;  %v910_v43 = vmul.f32 %v3095_v18, %v2638_v57  ;;  %v962_v13 = vmul.f32 %v3097_v46, %v2628_v53 }
 0x159   : > { %v1398_v17 = vmax.f32 %v1382_v20, 0.0  ;;  %v1238_v8 = vadd.f32 %v1222_v52, %v1185_v55  ;;  %v1082_v23 = vadd.f32 %v1066_v45, %v1029_v41  ;;  %v1118_v21 = vmul.f32 %v3123_v28, %v2643_v60 }
 0x15a   : > { %v1362_v30 = vmul.f32 %v2844_v7, %v1341_v48  ;;  %v978_v25 = vadd.f32 %v962_v13, %v910_v43  ;;  %v1014_v32 = vmul.f32 %v3112_v36, %v2631_v54  ;;  %v1067_v29 = vmul.f32 %v1202_v47, %v2647_v63 }
 0x15b   : > { %v1414_v18 = vmin.f32 %v1398_v17, 6.0  ;;  %v1290_v33 = vadd.f32 %v1274_v5, %v1238_v8  ;;  %v1134_v62 = vadd.f32 %v1118_v21, %v1082_v23  ;;  %v1170_v46 = vmul.f32 %v1305_v14, %v2650_v0  ;;  %v1257_v17 = vld [vmem:[#allocation2 + $0x130] sm:$0xff] }
 0x15c   : > { %v1383_v1 = vadd.f32 %v2859_v22, %v1362_v30  ;;  %v1223_v9 = vmul.f32 %v2720_v49, %v1203_v24  ;;  %v1275_v3 = vmul.f32 %v2723_v50, %v1255_v31  ;;  %v1030_v44 = vadd.f32 %v1014_v32, %v978_v25  ;;  %v1309_v21 = vld [vmem:[#allocation2 + $0x131] sm:$0xff] }
 0x15d   : > { %2148 = vmatprep.mubr.msk.f32.mxu1 %vm393_vm0, %v1414_v18  ;;  %v1342_v61 = vadd.f32 %v1326_v59, %v1290_v33  ;;  %v1186_v16 = vadd.f32 %v1170_v46, %v1134_v62  ;;  %v911_v36 = vmul.f32 %v3120_v19, %v2638_v57  ;;  %v963_v38 = vmul.f32 %v3123_v28, %v2628_v53 }
 0x15e   : > { %v1399_v39 = vmax.f32 %v1383_v1, 0.0  ;;  %v1083_v11 = vadd.f32 %v1067_v29, %v1030_v44  ;;  %v1119_v47 = vmul.f32 %v1254_v34, %v2643_v60  ;;  %v1015_v51 = vmul.f32 %v1305_v14, %v2631_v54  ;;  %v1256_v34 = vld [vmem:[#allocation2 + $0x128] sm:$0xff] }
 0x15f   : > { %v1363_v2 = vmul.f32 %v2844_v7, %v1342_v61  ;;  %v1239_v42 = vadd.f32 %v1223_v9, %v1186_v16  ;;  %v979_v40 = vadd.f32 %v963_v38, %v911_v36  ;;  %v1068_v26 = vmul.f32 %v1203_v24, %v2647_v63  ;;  %v1205_v14 = vld [vmem:[#allocation2 + $0x12f] sm:$0xff]  ;;  %v3211_v36 = vld [vmem:[%s3381_s6 + $0x1] ss:$0 sm:$0xff] }
 0x160   : > { %v1415_v35 = vmin.f32 %v1399_v39, 6.0  ;;  %v1135_v4 = vadd.f32 %v1119_v47, %v1083_v11  ;;  %v1171_v57 = vmul.f32 %v1306_v6, %v2650_v0  ;;  %v1224_v19 = vmul.f32 %v2720_v49, %v1204_v12  ;;  %v1308_v63 = vld [vmem:[#allocation2 + $0x129] sm:$0xff] }
 0x161   : > { %v1384_v53 = vadd.f32 %v2859_v22, %v1363_v2  ;;  %v1291_v28 = vadd.f32 %v1275_v3, %v1239_v42  ;;  %v1327_v37 = vmul.f32 %v2804_v15, %v1307_v10  ;;  %v1031_v45 = vadd.f32 %v1015_v51, %v979_v40  ;;  %v1424_v3 = vld [vmem:[#allocation3] sm:$0xff]  ;;  %v2023_v51 = vld [vmem:[%s2522_s20 + $0x10] sm:$0xff] }
 0x162   : > { %2149 = vmatmul.mubr.msk.f32.gmra.mrb[10].mxu1 %vm393_vm0, %v1415_v35  ;;  %v1187_v54 = vadd.f32 %v1171_v57, %v1135_v4  ;;  %v1120_v52 = vmul.f32 %v1255_v31, %v2643_v60  ;;  %v1276_v20 = vmul.f32 %v2723_v50, %v1256_v34  ;;  %v1172_v55 = vmul.f32 %v1307_v10, %v2650_v0  ;;  %v2024_v10 = vld [vmem:[%s2522_s20 + $0x18] sm:$0xff]  ;;  %v1426_v35 = vld [vmem:[#allocation3 + $0x10] sm:$0xff] }
 0x163   : > { %v1400_v58 = vmax.f32 %v1384_v53, 0.0  ;;  %v1343_v56 = vadd.f32 %v1327_v37, %v1291_v28  ;;  %v1084_v27 = vadd.f32 %v1068_v26, %v1031_v45  ;;  %v1225_v59 = vmul.f32 %v2720_v49, %v1205_v14  ;;  %v1427_v26 = vld [vmem:[#allocation3 + $0x18] sm:$0xff]  ;;  %v1429_v28 = vld [vmem:[#allocation3 + $0x28] sm:$0xff]  ;;  %v1428_v37 = vld [vmem:[#allocation3 + $0x20] sm:$0xff] }
 0x164   : > { %v1240_v6 = vadd.f32 %v1224_v19, %v1187_v54  ;;  %v1328_v13 = vmul.f32 %v2804_v15, %v1308_v63  ;;  %v1277_v0 = vmul.f32 %v2723_v50, %v1257_v17  ;;  %v1329_v49 = vmul.f32 %v2804_v15, %v1309_v21  ;;  %v1425_v15 = vld [vmem:[#allocation3 + $0x8] sm:$0xff]  ;;  %v2028_v21 = vld [vmem:[%s2522_s20 + $0x38] sm:$0xff] }
 0x165   : > { %v1416_v5 = vmin.f32 %v1400_v58, 6.0  ;;  %v1364_v41 = vmul.f32 %v2844_v7, %v1343_v56  ;;  %v1136_v48 = vadd.f32 %v1120_v52, %v1084_v27  ;;  %v2026_v27 = vld [vmem:[%s2522_s20 + $0x28] sm:$0xff] }
 0x166   : > { %v1292_v43 = vadd.f32 %v1276_v20, %v1240_v6  ;;  %v2025_v20 = vld [vmem:[%s2522_s20 + $0x20] sm:$0xff] }
 0x167   : > { %2151 = vmatprep.mubr.msk.f32.mxu1 %vm393_vm0, %v1416_v5  ;;  %v1385_v8 = vadd.f32 %v2859_v22, %v1364_v41  ;;  %v1188_v60 = vadd.f32 %v1172_v55, %v1136_v48  ;;  %v1431_v41 = vld [vmem:[#allocation3 + $0x38] sm:$0xff] }
 0x168   : > { %v1344_v23 = vadd.f32 %v1328_v13, %v1292_v43 }
 0x169   : > { %v1401_v24 = vmax.f32 %v1385_v8, 0.0  ;;  %v1241_v31 = vadd.f32 %v1225_v59, %v1188_v60  ;;  %v1430_v59 = vld [vmem:[#allocation3 + $0x30] sm:$0xff] }
 0x16a   : > { %v1365_v30 = vmul.f32 %v2844_v7, %v1344_v23 }
 0x16b   : > { %v1417_v25 = vmin.f32 %v1401_v24, 6.0  ;;  %v1293_v32 = vadd.f32 %v1277_v0, %v1241_v31 }
 0x16c   : > { %v1386_v29 = vadd.f32 %v2859_v22, %v1365_v30  ;;  %v2027_v30 = vld [vmem:[%s2522_s20 + $0x30] sm:$0xff] }
 0x16d   : > { %2152 = vmatmul.mubr.msk.f32.gmra.mrb[12].mxu1 %vm393_vm0, %v1417_v25  ;;  %v1345_v18 = vadd.f32 %v1329_v49, %v1293_v32 }
 0x16e   : > { %v1402_v33 = vmax.f32 %v1386_v29, 0.0 }
 0x16f   : > { %v1366_v62 = vmul.f32 %v2844_v7, %v1345_v18  ;;  %v3206_v7 = vld [vmem:[%s3381_s6] ss:$0 sm:$0xff]  ;;  %v1433_v18 = vld [vmem:[#allocation3 + $0x48] sm:$0xff] }
 0x170   : > { %v1418_v46 = vmin.f32 %v1402_v33, 6.0 }
 0x171   : > { %v1387_v1 = vadd.f32 %v2859_v22, %v1366_v62 }
 0x172   : > { %2154 = vmatprep.mubr.msk.f32.mxu1 %vm393_vm0, %v1418_v46  ;;  %v1432_v46 = vld [vmem:[#allocation3 + $0x40] sm:$0xff] }
 0x173   : > { %v1403_v50 = vmax.f32 %v1387_v1, 0.0  ;;  %v2030_v1 = vld [vmem:[%s2522_s20 + $0x48] sm:$0xff] }
 0x175   : > { %v1419_v9 = vmin.f32 %v1403_v50, 6.0 }
 0x177   : > { %2155 = vmatmul.mubr.msk.f32.gmra.mrb[14].mxu1 %vm393_vm0, %v1419_v9 }
 0x1fe   : > { %v2135_v44 = vpop.f32.mrb[0].mxu1 }
 0x1ff   : > { %v1634_v61 = vadd.f32 %v2135_v44, %v1425_v15  ;;  %v1554_v16 = vpop.f32.mrb[1].mxu1 }
 0x200   : > { %v1633_v12 = vadd.f32 %v1554_v16, %v1424_v3  ;;  %v2029_v3 = vld [vmem:[%s2522_s20 + $0x40] sm:$0xff] }
 0x201   : > { %1650 = vst.msk [vmem:[#allocation3 + $0x8] sm:$0xff] %vm415_vm1, %v1634_v61 }
 0x202   : > { %1649 = vst.msk [vmem:[#allocation3] sm:$0xff] %vm415_vm1, %v1633_v12 }
 0x208   : > { %v1669_v22 = vld [vmem:[#allocation3 + $0x8] sm:$0xff] }
 0x209   : > { %v1690_v38 = vmul.f32 %v3206_v7, %v1669_v22  ;;  %v1668_v39 = vld [vmem:[#allocation3] sm:$0xff] }
 0x20a   : > { %v1689_v11 = vmul.f32 %v3206_v7, %v1668_v39  ;;  %v1435_v39 = vld [vmem:[#allocation3 + $0x58] sm:$0xff] }
 0x20b   : > { %v1711_v47 = vadd.f32 %v3211_v36, %v1690_v38 }
 0x20c   : > { %v1710_v2 = vadd.f32 %v3211_v36, %v1689_v11 }
 0x20d   : > { %v1746_v42 = vadd.f32 %v2024_v10, %v1711_v47  ;;  %v1434_v10 = vld [vmem:[#allocation3 + $0x50] sm:$0xff] }
 0x20e   : > { %v1745_v40 = vadd.f32 %v2023_v51, %v1710_v2  ;;  %v2138_v4 = vpop.f32.mrb[2].mxu1 }
 0x20f   : > { %1762 = vst.msk [vmem:[%s3221_s21 + $0x8] sm:$0xff] %vm415_vm1, %v1746_v42  ;;  %v1636_v57 = vadd.f32 %v2138_v4, %v1427_v26  ;;  %v1564_v19 = vpop.f32.mrb[3].mxu1  ;;  %v2032_v26 = vld [vmem:[%s2522_s20 + $0x58] sm:$0xff] }
 0x210   : > { %1761 = vst.msk [vmem:[%s3221_s21] sm:$0xff] %vm415_vm1, %v1745_v40  ;;  %v1635_v53 = vadd.f32 %v1564_v19, %v1426_v35  ;;  %v2031_v19 = vld [vmem:[%s2522_s20 + $0x50] sm:$0xff] }
 0x211   : > { %1652 = vst.msk [vmem:[#allocation3 + $0x18] sm:$0xff] %vm415_vm1, %v1636_v57 }
 0x212   : > { %1651 = vst.msk [vmem:[#allocation3 + $0x10] sm:$0xff] %vm415_vm1, %v1635_v53 }
 0x215   : > { %v2141_v34 = vpop.f32.mrb[4].mxu1 }
 0x216   : > { %v1638_v45 = vadd.f32 %v2141_v34, %v1429_v28  ;;  %v1574_v54 = vpop.f32.mrb[5].mxu1  ;;  %v1437_v34 = vld [vmem:[#allocation3 + $0x68] sm:$0xff] }
 0x217   : > { %v1637_v14 = vadd.f32 %v1574_v54, %v1428_v37  ;;  %v1436_v54 = vld [vmem:[#allocation3 + $0x60] sm:$0xff] }
 0x218   : > { %v1671_v58 = vld [vmem:[#allocation3 + $0x18] sm:$0xff]  ;;  %1654 = vst.msk [vmem:[#allocation3 + $0x28] sm:$0xff] %vm415_vm1, %v1638_v45 }
 0x219   : > { %v1692_v56 = vmul.f32 %v3206_v7, %v1671_v58  ;;  %v1670_v63 = vld [vmem:[#allocation3 + $0x10] sm:$0xff]  ;;  %1653 = vst.msk [vmem:[#allocation3 + $0x20] sm:$0xff] %vm415_vm1, %v1637_v14 }
 0x21a   : > { %v1691_v52 = vmul.f32 %v3206_v7, %v1670_v63  ;;  %v2034_v63 = vld [vmem:[%s2522_s20 + $0x68] sm:$0xff] }
 0x21b   : > { %v1713_v6 = vadd.f32 %v3211_v36, %v1692_v56 }
 0x21c   : > { %v1712_v55 = vadd.f32 %v3211_v36, %v1691_v52 }
 0x21d   : > { %v1748_v5 = vadd.f32 %v2026_v27, %v1713_v6 }
 0x21e   : > { %v1747_v48 = vadd.f32 %v2025_v20, %v1712_v55  ;;  %v2033_v55 = vld [vmem:[%s2522_s20 + $0x60] sm:$0xff] }
 0x21f   : > { %1764 = vst.msk [vmem:[%s3221_s21 + $0x18] sm:$0xff] %vm415_vm1, %v1748_v5  ;;  %v1673_v43 = vld [vmem:[#allocation3 + $0x28] sm:$0xff] }
 0x220   : > { %v2144_v13 = vpop.f32.mrb[6].mxu1  ;;  %1763 = vst.msk [vmem:[%s3221_s21 + $0x10] sm:$0xff] %vm415_vm1, %v1747_v48  ;;  %v1694_v17 = vmul.f32 %v3206_v7, %v1673_v43  ;;  %v1672_v8 = vld [vmem:[#allocation3 + $0x20] sm:$0xff]  ;;  %v1439_v43 = vld [vmem:[#allocation3 + $0x78] sm:$0xff] }
 0x221   : > { %v1640_v60 = vadd.f32 %v2144_v13, %v1431_v41  ;;  %v1584_v23 = vpop.f32.mrb[7].mxu1  ;;  %v1693_v24 = vmul.f32 %v3206_v7, %v1672_v8  ;;  %v1438_v13 = vld [vmem:[#allocation3 + $0x70] sm:$0xff] }
 0x222   : > { %v1639_v31 = vadd.f32 %v1584_v23, %v1430_v59  ;;  %v1715_v0 = vadd.f32 %v3211_v36, %v1694_v17 }
 0x223   : > { %1656 = vst.msk [vmem:[#allocation3 + $0x38] sm:$0xff] %vm415_vm1, %v1640_v60  ;;  %v1714_v25 = vadd.f32 %v3211_v36, %v1693_v24 }
 0x224   : > { %1655 = vst.msk [vmem:[#allocation3 + $0x30] sm:$0xff] %vm415_vm1, %v1639_v31  ;;  %v1750_v32 = vadd.f32 %v2028_v21, %v1715_v0  ;;  %v2036_v31 = vld [vmem:[%s2522_s20 + $0x78] sm:$0xff] }
 0x225   : > { %v1749_v49 = vadd.f32 %v2027_v30, %v1714_v25 }
 0x226   : > { %1766 = vst.msk [vmem:[%s3221_s21 + $0x28] sm:$0xff] %vm415_vm1, %v1750_v32  ;;  %v2035_v32 = vld [vmem:[%s2522_s20 + $0x70] sm:$0xff] }
 0x227   : > { %1765 = vst.msk [vmem:[%s3221_s21 + $0x20] sm:$0xff] %vm415_vm1, %v1749_v49 }
 0x22a   : > { %v1675_v29 = vld [vmem:[#allocation3 + $0x38] sm:$0xff] }
 0x22b   : > { %v1696_v33 = vmul.f32 %v3206_v7, %v1675_v29  ;;  %v1674_v62 = vld [vmem:[#allocation3 + $0x30] sm:$0xff]  ;;  %v2147_v9 = vpop.f32.mrb[8].mxu1 }
 0x22c   : > { %v1695_v50 = vmul.f32 %v3206_v7, %v1674_v62  ;;  %v1642_v44 = vadd.f32 %v2147_v9, %v1433_v18  ;;  %v1594_v61 = vpop.f32.mrb[9].mxu1 }
 0x22d   : > { %v1717_v15 = vadd.f32 %v3211_v36, %v1696_v33  ;;  %v1641_v12 = vadd.f32 %v1594_v61, %v1432_v46 }
 0x22e   : > { %v1716_v16 = vadd.f32 %v3211_v36, %v1695_v50  ;;  %1658 = vst.msk [vmem:[#allocation3 + $0x48] sm:$0xff] %vm415_vm1, %v1642_v44 }
 0x22f   : > { %v1752_v22 = vadd.f32 %v2030_v1, %v1717_v15  ;;  %1657 = vst.msk [vmem:[#allocation3 + $0x40] sm:$0xff] %vm415_vm1, %v1641_v12  ;;  %v2038_v1 = vld [vmem:[%s2522_s20 + $0x88] sm:$0xff]  ;;  %v2037_v15 = vld [vmem:[%s2522_s20 + $0x80] sm:$0xff]  ;;  %s3323_s20 = scalar_lea.sflag [#allocation5], %s358_s9 }
 0x230   : > { %v1751_v38 = vadd.f32 %v2029_v3, %v1716_v16 }
 0x231   : > { %1768 = vst.msk [vmem:[%s3221_s21 + $0x38] sm:$0xff] %vm415_vm1, %v1752_v22 }
 0x232   : > { %1767 = vst.msk [vmem:[%s3221_s21 + $0x30] sm:$0xff] %vm415_vm1, %v1751_v38 }
 0x235   : > { %v1677_v11 = vld [vmem:[#allocation3 + $0x48] sm:$0xff]  ;;  %v2150_v47 = vpop.f32.mrb[10].mxu1 }
 0x236   : > { %v1698_v51 = vmul.f32 %v3206_v7, %v1677_v11  ;;  %v1676_v2 = vld [vmem:[#allocation3 + $0x40] sm:$0xff]  ;;  %v1644_v42 = vadd.f32 %v2150_v47, %v1435_v39  ;;  %v1604_v40 = vpop.f32.mrb[11].mxu1 }
 0x237   : > { %v1697_v35 = vmul.f32 %v3206_v7, %v1676_v2  ;;  %v1643_v4 = vadd.f32 %v1604_v40, %v1434_v10 }
 0x238   : > { %v1719_v57 = vadd.f32 %v3211_v36, %v1698_v51  ;;  %1660 = vst.msk [vmem:[#allocation3 + $0x58] sm:$0xff] %vm415_vm1, %v1644_v42 }
 0x239   : > { %v1718_v53 = vadd.f32 %v3211_v36, %v1697_v35  ;;  %1659 = vst.msk [vmem:[#allocation3 + $0x50] sm:$0xff] %vm415_vm1, %v1643_v4 }
 0x23a   : > { %v1754_v28 = vadd.f32 %v2032_v26, %v1719_v57 }
 0x23b   : > { %v1753_v37 = vadd.f32 %v2031_v19, %v1718_v53 }
 0x23c   : > { %1770 = vst.msk [vmem:[%s3221_s21 + $0x48] sm:$0xff] %vm415_vm1, %v1754_v28 }
 0x23d   : > { %1769 = vst.msk [vmem:[%s3221_s21 + $0x40] sm:$0xff] %vm415_vm1, %v1753_v37 }
 0x23f   : > { %v1679_v45 = vld [vmem:[#allocation3 + $0x58] sm:$0xff] }
 0x240   : > { %v1700_v14 = vmul.f32 %v3206_v7, %v1679_v45  ;;  %v1678_v58 = vld [vmem:[#allocation3 + $0x50] sm:$0xff]  ;;  %v2153_v56 = vpop.f32.mrb[12].mxu1 }
 0x241   : > { %v1699_v27 = vmul.f32 %v3206_v7, %v1678_v58  ;;  %v1646_v52 = vadd.f32 %v2153_v56, %v1437_v34  ;;  %v1614_v6 = vpop.f32.mrb[13].mxu1 }
 0x242   : > { %v1721_v20 = vadd.f32 %v3211_v36, %v1700_v14  ;;  %v1645_v5 = vadd.f32 %v1614_v6, %v1436_v54 }
 0x243   : > { %v1720_v41 = vadd.f32 %v3211_v36, %v1699_v27  ;;  %1662 = vst.msk [vmem:[#allocation3 + $0x68] sm:$0xff] %vm415_vm1, %v1646_v52 }
 0x244   : > { %v1756_v48 = vadd.f32 %v2034_v63, %v1721_v20  ;;  %1661 = vst.msk [vmem:[#allocation3 + $0x60] sm:$0xff] %vm415_vm1, %v1645_v5 }
 0x245   : > { %v1755_v59 = vadd.f32 %v2033_v55, %v1720_v41 }
 0x246   : > { %1772 = vst.msk [vmem:[%s3221_s21 + $0x58] sm:$0xff] %vm415_vm1, %v1756_v48 }
 0x247   : > { %1771 = vst.msk [vmem:[%s3221_s21 + $0x50] sm:$0xff] %vm415_vm1, %v1755_v59 }
 0x24a   : > { %v1681_v17 = vld [vmem:[#allocation3 + $0x68] sm:$0xff]  ;;  %v2156_v8 = vpop.f32.mrb[14].mxu1 }
 0x24b   : > { %v1702_v60 = vmul.f32 %v3206_v7, %v1681_v17  ;;  %v1680_v23 = vld [vmem:[#allocation3 + $0x60] sm:$0xff]  ;;  %v1648_v21 = vadd.f32 %v2156_v8, %v1439_v43  ;;  %v1624_v24 = vpop.f32.mrb[15].mxu1 }
 0x24c   : > { %v1701_v0 = vmul.f32 %v3206_v7, %v1680_v23  ;;  %v1647_v30 = vadd.f32 %v1624_v24, %v1438_v13 }
 0x24d   : > { %v1723_v25 = vadd.f32 %v3211_v36, %v1702_v60  ;;  %1664 = vst.msk [vmem:[#allocation3 + $0x78] sm:$0xff] %vm415_vm1, %v1648_v21 }
 0x24e   : > { %v1722_v49 = vadd.f32 %v3211_v36, %v1701_v0  ;;  %1663 = vst.msk [vmem:[#allocation3 + $0x70] sm:$0xff] %vm415_vm1, %v1647_v30 }
 0x24f   : > { %v1758_v29 = vadd.f32 %v2036_v31, %v1723_v25 }
 0x250   : > { %v1757_v18 = vadd.f32 %v2035_v32, %v1722_v49 }
 0x251   : > { %1774 = vst.msk [vmem:[%s3221_s21 + $0x68] sm:$0xff] %vm415_vm1, %v1758_v29 }
 0x252   : > { %1773 = vst.msk [vmem:[%s3221_s21 + $0x60] sm:$0xff] %vm415_vm1, %v1757_v18 }
 0x254   : > { %v1683_v33 = vld [vmem:[#allocation3 + $0x78] sm:$0xff] }
 0x255   : > { %v1704_v62 = vmul.f32 %v3206_v7, %v1683_v33  ;;  %v1682_v46 = vld [vmem:[#allocation3 + $0x70] sm:$0xff] }
 0x256   : > { %v1703_v50 = vmul.f32 %v3206_v7, %v1682_v46 }
 0x257   : > { %v1725_v9 = vadd.f32 %v3211_v36, %v1704_v62 }
 0x258   : > { %v1724_v3 = vadd.f32 %v3211_v36, %v1703_v50 }
 0x259   : > { %v1760_v44 = vadd.f32 %v2038_v1, %v1725_v9 }
 0x25a   : > { %v1759_v61 = vadd.f32 %v2037_v15, %v1724_v3 }
 0x25b   : > { %1776 = vst.msk [vmem:[%s3221_s21 + $0x78] sm:$0xff] %vm415_vm1, %v1760_v44 }
 0x25c   : > { %1775 = vst.msk [vmem:[%s3221_s21 + $0x70] sm:$0xff] %vm415_vm1, %v1759_v61 }
 0x25d   : > { %2257 = shalt.err (!%p2254_p6)
}
 0x25e   : > { %s2258_s9 = scalar_lea.hbm %s3315_s17, 2048  ;;  %s2262_s28 = scalar_lea.hbm %s3382_s7, 8192 }
 0x25f   : > { %p2259_p7 = scmp.ne.s32.totalorder %s3315_s17, %s2258_s9  ;;  %p2263_p11 = scmp.lt.u32.totalorder %s3315_s17, %s3382_s7 }
 0x260   : > { %p2264_p12 = scmp.lt.u32.totalorder %s2262_s28, %s2258_s9  ;;  %p2266_p0 = scmp.lt.u32.totalorder %s2258_s9, %s3315_s17 }
 0x261   : > { %p2260_p9 = pnand %p2259_p7, %p2435_p3 }
 0x262   : > { %p2265_p13 = por %p2264_p12, %p2263_p11 }
 0x263   : > { %p2261_p10 = pneg %p2260_p9 }
 0x264   : > { %p2267_p1 = por %p2266_p0, %p2265_p13 }
 0x266   : > { %p2268_p2 = pnand %p2267_p1, %p2261_p10 }
 0x268   : > { %2271 = shalt.err (!%p2268_p2)
}
 0x269   : > { %s2342_s18 = smov 128   ;;  %s2343_s23 = smov 8  }
 0x26a   : > { %2170 = dma.vmem_to_hbm [thread:$0]  (%p2435_p3), %s3310_s13, 2048, %s3315_s17, %s3323_s20, %s2342_s18, %s2342_s18, %s2343_s23  }
 0x26b PF: > { %p2176_p4 = scmp.ge.s32.totalorder %s2338_s8, 2  ;;  %s1809_s10 = sand.u32 1, %s2310_s24  }
 0x26c   : > { %s1810_s9 = scalar_lea.sflag [#allocation5], %s1809_s10 }
 0x26d   : > { %p2173_p5 = pnand %p2176_p4, %p2444_p8 }
 0x26f   : > { %2305 = dma.done.wait (!%p2173_p5), %s1810_s9, 2048  }
 0x270   : > { %2307 = vsyncadd (!%p2173_p5), %s1810_s9, 4294965248  ;;  %s20_s8 = sadd.s32 1, %s2338_s8   ;;  %s3397_s24 = smov %s2314_s25 }
 0x271   : > { %p17_p6 = scmp.ge.s32.totalorder %s20_s8, 6   ;;  %s3398_s25 = smov %s2318_s26 }
 0x272   : > { %s3399_s26 = smov %s2453_s19  ;;  %s3400_s27 = smov %s2330_s29 }
 0x273   : > { %s3401_s28 = smov %s2334_s30  ;;  %s3402_s29 = smov %s3405_s11 }
 0x274   : > { %s3403_s30 = smov %s3409_s12  ;;  %19 = sbr.rel (!%p17_p6) target bundleno = 5 (0x5), region = 110 }
 0x27b   :  { %1815 = vsyncpa [#allocation5], 1 }
 0x27c   :  { %1817 = vsyncpa [#allocation5 + $0x1], 1 }

</bundles_post_ra>
